<compile_context>
chip_gen: v7x
topology: tpu7x:2x2x1
jax: 0.10.0
libtpu: 0.0.40
codegen_flags: <defaults>
</compile_context>

<pallas_src>
from functools import partial

import numpy as np
import jax
import jax.numpy as jnp
from jax.experimental import pallas as pl
from jax.experimental.pallas import tpu as pltpu


def _round_up(n: int, m: int) -> int:
    return ((n + m - 1) // m) * m


def _fused_backbone_kernel(x_ref, m_ref, w1_ref, b1_ref, w2_ref, b2_ref,
                           o1_ref, o2_ref, *, W):
    """Fused [Conv3x3(pad=1) -> ReLU] x 2 on a lane-dense (C, L) slab.

    Layouts (all lane-dense, images concatenated along the lane axis):
      x_ref : (Cp, Lb)     input slab, Lb = images_per_block * H*W
      m_ref : (9, Lb)      precomputed 0/1 border-mask row per conv tap
      w1_ref: (9, C1, Cp)  conv1 weights, one (C1, Cp) tile per tap
      b1_ref: (C1, 1)
      w2_ref: (9, C2, C1)
      b2_ref: (C2, 1)
      o1_ref: (C1, Lb)     hooked output of layer 1 (Conv+ReLU)
      o2_ref: (C2, Lb)     hooked output of layer 3 (Conv+ReLU)
    """
    x = x_ref[...]
    # Masks depend only on lane position; identical for both stages, loaded once.
    m = m_ref[...]

    def conv3x3_relu(inp, w_ref, b):
        Cout = w_ref.shape[1]
        L = inp.shape[1]
        acc = jnp.zeros((Cout, L), jnp.float32)
        t = 0
        for dy in range(3):
            for dx in range(3):
                off = (dy - 1) * W + (dx - 1)
                if off == 0:
                    tap = inp                       # centre tap: no shift, no mask
                else:
                    # tap[q] = inp[q + off]; wrapped / out-of-image lanes are
                    # zeroed by the mask row.  Correct because |off| <= W+1 < H*W,
                    # so every lane whose roll wraps (across image or slab
                    # boundaries) is also border-masked (see forward() assert).
                    tap = jnp.roll(inp, -off, axis=1) * m[t:t + 1, :]
                # One small accumulating matmul per tap: no (9*C, L) im2col ever
                # materializes, so no concat stores / register spills.
                # Default matmul precision: empirically within 1e-4 of the
                # Precision.HIGHEST XLA reference at these tiny C/K.
                acc = acc + jnp.dot(w_ref[t], tap,
                                    preferred_element_type=jnp.float32)
                t += 1
        return jnp.maximum(acc + b, 0.0)            # bias + ReLU fused epilogue

    f1 = conv3x3_relu(x, w1_ref, b1_ref[...])       # (C1, Lb) f32, stays in VMEM
    o1_ref[...] = f1.astype(o1_ref.dtype)           # lane-dense store (mult. of 128)
    f2 = conv3x3_relu(f1, w2_ref, b2_ref[...])      # (C2, Lb)
    o2_ref[...] = f2.astype(o2_ref.dtype)


@partial(jax.jit, static_argnames=("cin_p", "num_blocks"))
def _backbone_forward(x_nchw, masks, w1t, b1, w2t, b2, *, cin_p, num_blocks):
    """x_nchw: (NB, C, H, W) stacked batch (gt + mod)."""
    NB, C, H, W = x_nchw.shape
    HW = H * W
    L = NB * HW
    Lb = L // num_blocks
    C1 = w1t.shape[1]
    C2 = w2t.shape[1]

    x = x_nchw.reshape(NB, C, HW)
    if cin_p != C:                                   # sublane-align channel axis
        x = jnp.pad(x, ((0, 0), (0, cin_p - C), (0, 0)))
    # Tiny wrapper-side transpose (~KBs) -> lane-dense (Cp, NB*HW) slab, so the
    # kernel needs no in-kernel batch merge.
    x_slab = x.transpose(1, 0, 2).reshape(cin_p, L)

    kernel = partial(_fused_backbone_kernel, W=W)
    f1, f2 = pl.pallas_call(
        kernel,
        out_shape=(
            jax.ShapeDtypeStruct((C1, L), x_slab.dtype),
            jax.ShapeDtypeStruct((C2, L), x_slab.dtype),
        ),
        # Batch-split grid: block i owns images [i*NB/num_blocks, ...).  The
        # border masks prevent any cross-image leakage, so this is a pure data
        # split -> both TensorCores on v7x, negligible overhead on v5e/v6e.
        grid=(num_blocks,),
        in_specs=[
            pl.BlockSpec((cin_p, Lb), lambda i: (0, i)),
            pl.BlockSpec(masks.shape, lambda i: (0, 0)),
            pl.BlockSpec(w1t.shape, lambda i: (0, 0, 0)),
            pl.BlockSpec(b1.shape, lambda i: (0, 0)),
            pl.BlockSpec(w2t.shape, lambda i: (0, 0, 0)),
            pl.BlockSpec(b2.shape, lambda i: (0, 0)),
        ],
        out_specs=(
            pl.BlockSpec((C1, Lb), lambda i: (0, i)),
            pl.BlockSpec((C2, Lb), lambda i: (0, i)),
        ),
        compiler_params=pltpu.CompilerParams(
            dimension_semantics=("parallel",),
        ),
    )(x_slab, masks, w1t, b1, w2t, b2)

    # Tiny wrapper-side un-transpose back to NCHW (outputs are ~tens of KiB).
    o1 = f1.reshape(C1, NB, HW).transpose(1, 0, 2).reshape(NB, C1, H, W)
    o2 = f2.reshape(C2, NB, HW).transpose(1, 0, 2).reshape(NB, C2, H, W)
    return o1, o2


def _make_tap_masks(h, w, images_per_block):
    """(9, images_per_block*H*W) 0/1 f32 border-mask table, one row per tap."""
    yy, xx = np.meshgrid(np.arange(h), np.arange(w), indexing="ij")
    rows = []
    for dy in (-1, 0, 1):
        for dx in (-1, 0, 1):
            valid = ((yy + dy >= 0) & (yy + dy < h) &
                     (xx + dx >= 0) & (xx + dx < w))
            rows.append(valid.reshape(-1))
    m = np.stack(rows).astype(np.float32)            # (9, HW)
    return jnp.asarray(np.tile(m, (1, images_per_block)))


class SimpleConvFeatureExtractor:
    """JAX/Pallas analogue of FeatureExtractor with a concrete 4-layer backbone.

    Backbone layers: 0=Conv2d(Cin->8), 1=ReLU, 2=Conv2d(8->16), 3=ReLU.
    Hooked (extracted) layer indices: [1, 3].
    """
    # TODO(synk): PyTorch forward-hook registration has no Pallas equivalent;
    # feature capture is expressed directly as the fused kernel's two outputs.

    def __init__(self, in_channels=4):
        self.layer_indices = [1, 3]
        c1, c2 = 8, 16
        self.c1, self.c2 = c1, c2
        self.in_channels = in_channels
        self.cin_p = _round_up(in_channels, 8)   # sublane-align the channel axis
        self._mask_cache = {}

        key = jax.random.PRNGKey(42)
        k1, k2, k3, k4 = jax.random.split(key, 4)
        # deterministic, kaiming-ish scaled init; weights kept in HWIO layout
        self.w1 = jax.random.normal(k1, (3, 3, in_channels, c1), jnp.float32) \
            * (1.0 / (3 * 3 * in_channels) ** 0.5)
        self.b1 = jax.random.normal(k2, (c1,), jnp.float32) * 0.01
        self.w2 = jax.random.normal(k3, (3, 3, c1, c2), jnp.float32) \
            * (1.0 / (3 * 3 * c1) ** 0.5)
        self.b2 = jax.random.normal(k4, (c2,), jnp.float32) * 0.01

        # Per-tap (Cout, Cin) weight tiles: tap ordering (dy outer, dx inner)
        # matches the kernel loop and the mask table; padded input channels
        # get zero weights.
        w1_pad = jnp.pad(self.w1,
                         ((0, 0), (0, 0), (0, self.cin_p - in_channels), (0, 0)))
        self.w1_taps = w1_pad.reshape(9, self.cin_p, c1).transpose(0, 2, 1)  # (9,c1,cin_p)
        self.w2_taps = self.w2.reshape(9, c1, c2).transpose(0, 2, 1)         # (9,c2,c1)
        self.b1_col = self.b1.reshape(c1, 1)
        self.b2_col = self.b2.reshape(c2, 1)

    def _get_masks(self, h, w, images_per_block):
        key = (h, w, images_per_block)
        if key not in self._mask_cache:
            self._mask_cache[key] = _make_tap_masks(h, w, images_per_block)
        return self._mask_cache[key]

    def forward(self, x_nchw):
        """Returns Dict[int, array] of hooked layer outputs in NCHW."""
        n, c, h, w = x_nchw.shape
        assert c == self.in_channels
        hw = h * w
        # Roll-wrap safety invariant: max |tap offset| = W+1 must be < H*W so
        # every wrapped lane is also border-masked.
        assert hw > w + 1, "image too small for the roll+mask im2col scheme"

        # Split the batch across 2 grid blocks (both TCs on v7x) when the
        # per-block lane extent stays a multiple of 128.
        num_blocks = 2 if (n % 2 == 0 and n >= 2 and ((n // 2) * hw) % 128 == 0) else 1
        masks = self._get_masks(h, w, n // num_blocks)

        o1, o2 = _backbone_forward(x_nchw, masks,
                                   self.w1_taps, self.b1_col,
                                   self.w2_taps, self.b2_col,
                                   cin_p=self.cin_p, num_blocks=num_blocks)
        return {1: o1, 3: o2}

    def extract_features(self, img_gt, img_mod):
        # Fuse both images into a single pallas_call by stacking along batch.
        n = img_gt.shape[0]
        feats = self.forward(jnp.concatenate([img_gt, img_mod], axis=0))
        feats_gt = {k: v[:n] for k, v in feats.items()}
        feats_mod = {k: v[n:] for k, v in feats.items()}
        return feats_gt, feats_mod


def _conv3x3_relu_ref(x_nchw, w_hwio, b):
    """Plain-XLA reference: Conv2d(3x3, padding=1) + bias + ReLU."""
    out = jax.lax.conv_general_dilated(
        x_nchw, w_hwio, window_strides=(1, 1), padding="SAME",
        dimension_numbers=("NCHW", "HWIO", "NCHW"),
        precision=jax.lax.Precision.HIGHEST)
    return jnp.maximum(out + b.reshape(1, -1, 1, 1), 0.0)


if __name__ == "__main__":
    key = jax.random.PRNGKey(0)
    k_gt, k_mod = jax.random.split(key)
    # small NCHW inputs consistent with an image backbone
    img_gt = jax.random.normal(k_gt, (2, 4, 16, 16), jnp.float32)
    img_mod = jax.random.normal(k_mod, (2, 4, 16, 16), jnp.float32)

    extractor = SimpleConvFeatureExtractor(in_channels=4)
    feats_gt, feats_mod = extractor.extract_features(img_gt, img_mod)
    jax.block_until_ready((feats_gt, feats_mod))

    assert feats_gt[1].shape == (2, 8, 16, 16)
    assert feats_gt[3].shape == (2, 16, 16, 16)
    assert feats_mod[1].shape == (2, 8, 16, 16)
    assert feats_mod[3].shape == (2, 16, 16, 16)

    # Cross-check the fused Pallas path against the plain-XLA conv reference.
    for img, feats in ((img_gt, feats_gt), (img_mod, feats_mod)):
        r1 = _conv3x3_relu_ref(img, extractor.w1, extractor.b1)
        r2 = _conv3x3_relu_ref(r1, extractor.w2, extractor.b2)
        assert jnp.allclose(feats[1], r1, atol=1e-4, rtol=1e-4)
        assert jnp.allclose(feats[3], r2, atol=1e-4, rtol=1e-4)

    print("KERNEL_OK")
</pallas_src>

<mosaic_0001>
module attributes {stable_mosaic.version = 11 : i64} {
  func.func @_fused_backbone_kernel(%arg0: i32, %arg1: memref<8x512xf32, #tpu.memory_space<vmem>>, %arg2: memref<9x512xf32, #tpu.memory_space<vmem>>, %arg3: memref<9x8x8xf32, #tpu.memory_space<vmem>>, %arg4: memref<8x1xf32, #tpu.memory_space<vmem>>, %arg5: memref<9x16x8xf32, #tpu.memory_space<vmem>>, %arg6: memref<16x1xf32, #tpu.memory_space<vmem>>, %arg7: memref<8x512xf32, #tpu.memory_space<vmem>>, %arg8: memref<16x512xf32, #tpu.memory_space<vmem>>) attributes {dimension_semantics = [#tpu.dimension_semantics<parallel>], iteration_bounds = array<i64: 2>, scalar_prefetch = 0 : i64, scratch_operands = 0 : i64, tpu.core_type = #tpu.core_type<tc>, window_params = [{transform_indices = @transform_0, window_bounds = array<i64: 8, 512>}, {pipeline_mode = #tpu.pipeline_mode<synchronous>, transform_indices = @transform_1, window_bounds = array<i64: 9, 512>}, {pipeline_mode = #tpu.pipeline_mode<synchronous>, transform_indices = @transform_2, window_bounds = array<i64: 9, 8, 8>}, {pipeline_mode = #tpu.pipeline_mode<synchronous>, transform_indices = @transform_3, window_bounds = array<i64: 8, 1>}, {pipeline_mode = #tpu.pipeline_mode<synchronous>, transform_indices = @transform_4, window_bounds = array<i64: 9, 16, 8>}, {pipeline_mode = #tpu.pipeline_mode<synchronous>, transform_indices = @transform_5, window_bounds = array<i64: 16, 1>}, {transform_indices = @transform_6, window_bounds = array<i64: 8, 512>}, {transform_indices = @transform_7, window_bounds = array<i64: 16, 512>}]} {
    %c0 = arith.constant 0 : index
    %c0_0 = arith.constant 0 : index
    %0 = vector.load %arg1[%c0, %c0_0] : memref<8x512xf32, #tpu.memory_space<vmem>>, vector<8x512xf32>
    %c0_1 = arith.constant 0 : index
    %c0_2 = arith.constant 0 : index
    %1 = vector.load %arg2[%c0_1, %c0_2] : memref<9x512xf32, #tpu.memory_space<vmem>>, vector<9x512xf32>
    %c0_3 = arith.constant 0 : index
    %c0_4 = arith.constant 0 : index
    %2 = vector.load %arg4[%c0_3, %c0_4] : memref<8x1xf32, #tpu.memory_space<vmem>>, vector<8x1xf32>
    %cst = arith.constant 0.000000e+00 : f32
    %3 = vector.broadcast %cst : f32 to vector<8x512xf32>
    %4 = vector.extract_strided_slice %0 {offsets = [0, 495], sizes = [8, 17], strides = [1, 1]} : vector<8x512xf32> to vector<8x17xf32>
    %5 = vector.extract_strided_slice %0 {offsets = [0, 0], sizes = [8, 495], strides = [1, 1]} : vector<8x512xf32> to vector<8x495xf32>
    %6 = tpu.concatenate %4, %5 in 1 : vector<8x17xf32>, vector<8x495xf32> -> vector<8x512xf32>
    %7 = vector.extract_strided_slice %1 {offsets = [0, 0], sizes = [1, 512], strides = [1, 1]} : vector<9x512xf32> to vector<1x512xf32>
    %8 = vector.broadcast %7 : vector<1x512xf32> to vector<8x512xf32>
    %9 = arith.mulf %6, %8 : vector<8x512xf32>
    %c0_5 = arith.constant 0 : index
    %c0_6 = arith.constant 0 : index
    %c0_7 = arith.constant 0 : index
    %10 = vector.load %arg3[%c0_5, %c0_6, %c0_7] : memref<9x8x8xf32, #tpu.memory_space<vmem>>, vector<1x8x8xf32>
    %11 = vector.shape_cast %10 : vector<1x8x8xf32> to vector<8x8xf32>
    %cst_8 = arith.constant dense<0.000000e+00> : vector<8x512xf32>
    %12 = tpu.matmul %11, %9, %cst_8 {dimension_numbers = #tpu.dot_dimension_numbers<[1], [0], [0], [1], [0, 0, 1, 1], [], []>} : vector<8x8xf32>, vector<8x512xf32>, vector<8x512xf32> -> vector<8x512xf32>
    %13 = arith.addf %3, %12 : vector<8x512xf32>
    %14 = vector.extract_strided_slice %0 {offsets = [0, 496], sizes = [8, 16], strides = [1, 1]} : vector<8x512xf32> to vector<8x16xf32>
    %15 = vector.extract_strided_slice %0 {offsets = [0, 0], sizes = [8, 496], strides = [1, 1]} : vector<8x512xf32> to vector<8x496xf32>
    %16 = tpu.concatenate %14, %15 in 1 : vector<8x16xf32>, vector<8x496xf32> -> vector<8x512xf32>
    %17 = vector.extract_strided_slice %1 {offsets = [1, 0], sizes = [1, 512], strides = [1, 1]} : vector<9x512xf32> to vector<1x512xf32>
    %18 = vector.broadcast %17 : vector<1x512xf32> to vector<8x512xf32>
    %19 = arith.mulf %16, %18 : vector<8x512xf32>
    %c1 = arith.constant 1 : index
    %c0_9 = arith.constant 0 : index
    %c0_10 = arith.constant 0 : index
    %20 = vector.load %arg3[%c1, %c0_9, %c0_10] : memref<9x8x8xf32, #tpu.memory_space<vmem>>, vector<1x8x8xf32>
    %21 = vector.shape_cast %20 : vector<1x8x8xf32> to vector<8x8xf32>
    %cst_11 = arith.constant dense<0.000000e+00> : vector<8x512xf32>
    %22 = tpu.matmul %21, %19, %cst_11 {dimension_numbers = #tpu.dot_dimension_numbers<[1], [0], [0], [1], [0, 0, 1, 1], [], []>} : vector<8x8xf32>, vector<8x512xf32>, vector<8x512xf32> -> vector<8x512xf32>
    %23 = arith.addf %13, %22 : vector<8x512xf32>
    %24 = vector.extract_strided_slice %0 {offsets = [0, 497], sizes = [8, 15], strides = [1, 1]} : vector<8x512xf32> to vector<8x15xf32>
    %25 = vector.extract_strided_slice %0 {offsets = [0, 0], sizes = [8, 497], strides = [1, 1]} : vector<8x512xf32> to vector<8x497xf32>
    %26 = tpu.concatenate %24, %25 in 1 : vector<8x15xf32>, vector<8x497xf32> -> vector<8x512xf32>
    %27 = vector.extract_strided_slice %1 {offsets = [2, 0], sizes = [1, 512], strides = [1, 1]} : vector<9x512xf32> to vector<1x512xf32>
    %28 = vector.broadcast %27 : vector<1x512xf32> to vector<8x512xf32>
    %29 = arith.mulf %26, %28 : vector<8x512xf32>
    %c2 = arith.constant 2 : index
    %c0_12 = arith.constant 0 : index
    %c0_13 = arith.constant 0 : index
    %30 = vector.load %arg3[%c2, %c0_12, %c0_13] : memref<9x8x8xf32, #tpu.memory_space<vmem>>, vector<1x8x8xf32>
    %31 = vector.shape_cast %30 : vector<1x8x8xf32> to vector<8x8xf32>
    %cst_14 = arith.constant dense<0.000000e+00> : vector<8x512xf32>
    %32 = tpu.matmul %31, %29, %cst_14 {dimension_numbers = #tpu.dot_dimension_numbers<[1], [0], [0], [1], [0, 0, 1, 1], [], []>} : vector<8x8xf32>, vector<8x512xf32>, vector<8x512xf32> -> vector<8x512xf32>
    %33 = arith.addf %23, %32 : vector<8x512xf32>
    %34 = vector.extract_strided_slice %0 {offsets = [0, 511], sizes = [8, 1], strides = [1, 1]} : vector<8x512xf32> to vector<8x1xf32>
    %35 = vector.extract_strided_slice %0 {offsets = [0, 0], sizes = [8, 511], strides = [1, 1]} : vector<8x512xf32> to vector<8x511xf32>
    %36 = tpu.concatenate %34, %35 in 1 : vector<8x1xf32>, vector<8x511xf32> -> vector<8x512xf32>
    %37 = vector.extract_strided_slice %1 {offsets = [3, 0], sizes = [1, 512], strides = [1, 1]} : vector<9x512xf32> to vector<1x512xf32>
    %38 = vector.broadcast %37 : vector<1x512xf32> to vector<8x512xf32>
    %39 = arith.mulf %36, %38 : vector<8x512xf32>
    %c3 = arith.constant 3 : index
    %c0_15 = arith.constant 0 : index
    %c0_16 = arith.constant 0 : index
    %40 = vector.load %arg3[%c3, %c0_15, %c0_16] : memref<9x8x8xf32, #tpu.memory_space<vmem>>, vector<1x8x8xf32>
    %41 = vector.shape_cast %40 : vector<1x8x8xf32> to vector<8x8xf32>
    %cst_17 = arith.constant dense<0.000000e+00> : vector<8x512xf32>
    %42 = tpu.matmul %41, %39, %cst_17 {dimension_numbers = #tpu.dot_dimension_numbers<[1], [0], [0], [1], [0, 0, 1, 1], [], []>} : vector<8x8xf32>, vector<8x512xf32>, vector<8x512xf32> -> vector<8x512xf32>
    %43 = arith.addf %33, %42 : vector<8x512xf32>
    %c4 = arith.constant 4 : index
    %c0_18 = arith.constant 0 : index
    %c0_19 = arith.constant 0 : index
    %44 = vector.load %arg3[%c4, %c0_18, %c0_19] : memref<9x8x8xf32, #tpu.memory_space<vmem>>, vector<1x8x8xf32>
    %45 = vector.shape_cast %44 : vector<1x8x8xf32> to vector<8x8xf32>
    %cst_20 = arith.constant dense<0.000000e+00> : vector<8x512xf32>
    %46 = tpu.matmul %45, %0, %cst_20 {dimension_numbers = #tpu.dot_dimension_numbers<[1], [0], [0], [1], [0, 0, 1, 1], [], []>} : vector<8x8xf32>, vector<8x512xf32>, vector<8x512xf32> -> vector<8x512xf32>
    %47 = arith.addf %43, %46 : vector<8x512xf32>
    %48 = vector.extract_strided_slice %0 {offsets = [0, 1], sizes = [8, 511], strides = [1, 1]} : vector<8x512xf32> to vector<8x511xf32>
    %49 = vector.extract_strided_slice %0 {offsets = [0, 0], sizes = [8, 1], strides = [1, 1]} : vector<8x512xf32> to vector<8x1xf32>
    %50 = tpu.concatenate %48, %49 in 1 : vector<8x511xf32>, vector<8x1xf32> -> vector<8x512xf32>
    %51 = vector.extract_strided_slice %1 {offsets = [5, 0], sizes = [1, 512], strides = [1, 1]} : vector<9x512xf32> to vector<1x512xf32>
    %52 = vector.broadcast %51 : vector<1x512xf32> to vector<8x512xf32>
    %53 = arith.mulf %50, %52 : vector<8x512xf32>
    %c5 = arith.constant 5 : index
    %c0_21 = arith.constant 0 : index
    %c0_22 = arith.constant 0 : index
    %54 = vector.load %arg3[%c5, %c0_21, %c0_22] : memref<9x8x8xf32, #tpu.memory_space<vmem>>, vector<1x8x8xf32>
    %55 = vector.shape_cast %54 : vector<1x8x8xf32> to vector<8x8xf32>
    %cst_23 = arith.constant dense<0.000000e+00> : vector<8x512xf32>
    %56 = tpu.matmul %55, %53, %cst_23 {dimension_numbers = #tpu.dot_dimension_numbers<[1], [0], [0], [1], [0, 0, 1, 1], [], []>} : vector<8x8xf32>, vector<8x512xf32>, vector<8x512xf32> -> vector<8x512xf32>
    %57 = arith.addf %47, %56 : vector<8x512xf32>
    %58 = vector.extract_strided_slice %0 {offsets = [0, 15], sizes = [8, 497], strides = [1, 1]} : vector<8x512xf32> to vector<8x497xf32>
    %59 = vector.extract_strided_slice %0 {offsets = [0, 0], sizes = [8, 15], strides = [1, 1]} : vector<8x512xf32> to vector<8x15xf32>
    %60 = tpu.concatenate %58, %59 in 1 : vector<8x497xf32>, vector<8x15xf32> -> vector<8x512xf32>
    %61 = vector.extract_strided_slice %1 {offsets = [6, 0], sizes = [1, 512], strides = [1, 1]} : vector<9x512xf32> to vector<1x512xf32>
    %62 = vector.broadcast %61 : vector<1x512xf32> to vector<8x512xf32>
    %63 = arith.mulf %60, %62 : vector<8x512xf32>
    %c6 = arith.constant 6 : index
    %c0_24 = arith.constant 0 : index
    %c0_25 = arith.constant 0 : index
    %64 = vector.load %arg3[%c6, %c0_24, %c0_25] : memref<9x8x8xf32, #tpu.memory_space<vmem>>, vector<1x8x8xf32>
    %65 = vector.shape_cast %64 : vector<1x8x8xf32> to vector<8x8xf32>
    %cst_26 = arith.constant dense<0.000000e+00> : vector<8x512xf32>
    %66 = tpu.matmul %65, %63, %cst_26 {dimension_numbers = #tpu.dot_dimension_numbers<[1], [0], [0], [1], [0, 0, 1, 1], [], []>} : vector<8x8xf32>, vector<8x512xf32>, vector<8x512xf32> -> vector<8x512xf32>
    %67 = arith.addf %57, %66 : vector<8x512xf32>
    %68 = vector.extract_strided_slice %0 {offsets = [0, 16], sizes = [8, 496], strides = [1, 1]} : vector<8x512xf32> to vector<8x496xf32>
    %69 = vector.extract_strided_slice %0 {offsets = [0, 0], sizes = [8, 16], strides = [1, 1]} : vector<8x512xf32> to vector<8x16xf32>
    %70 = tpu.concatenate %68, %69 in 1 : vector<8x496xf32>, vector<8x16xf32> -> vector<8x512xf32>
    %71 = vector.extract_strided_slice %1 {offsets = [7, 0], sizes = [1, 512], strides = [1, 1]} : vector<9x512xf32> to vector<1x512xf32>
    %72 = vector.broadcast %71 : vector<1x512xf32> to vector<8x512xf32>
    %73 = arith.mulf %70, %72 : vector<8x512xf32>
    %c7 = arith.constant 7 : index
    %c0_27 = arith.constant 0 : index
    %c0_28 = arith.constant 0 : index
    %74 = vector.load %arg3[%c7, %c0_27, %c0_28] : memref<9x8x8xf32, #tpu.memory_space<vmem>>, vector<1x8x8xf32>
    %75 = vector.shape_cast %74 : vector<1x8x8xf32> to vector<8x8xf32>
    %cst_29 = arith.constant dense<0.000000e+00> : vector<8x512xf32>
    %76 = tpu.matmul %75, %73, %cst_29 {dimension_numbers = #tpu.dot_dimension_numbers<[1], [0], [0], [1], [0, 0, 1, 1], [], []>} : vector<8x8xf32>, vector<8x512xf32>, vector<8x512xf32> -> vector<8x512xf32>
    %77 = arith.addf %67, %76 : vector<8x512xf32>
    %78 = vector.extract_strided_slice %0 {offsets = [0, 17], sizes = [8, 495], strides = [1, 1]} : vector<8x512xf32> to vector<8x495xf32>
    %79 = vector.extract_strided_slice %0 {offsets = [0, 0], sizes = [8, 17], strides = [1, 1]} : vector<8x512xf32> to vector<8x17xf32>
    %80 = tpu.concatenate %78, %79 in 1 : vector<8x495xf32>, vector<8x17xf32> -> vector<8x512xf32>
    %81 = vector.extract_strided_slice %1 {offsets = [8, 0], sizes = [1, 512], strides = [1, 1]} : vector<9x512xf32> to vector<1x512xf32>
    %82 = vector.broadcast %81 : vector<1x512xf32> to vector<8x512xf32>
    %83 = arith.mulf %80, %82 : vector<8x512xf32>
    %c8 = arith.constant 8 : index
    %c0_30 = arith.constant 0 : index
    %c0_31 = arith.constant 0 : index
    %84 = vector.load %arg3[%c8, %c0_30, %c0_31] : memref<9x8x8xf32, #tpu.memory_space<vmem>>, vector<1x8x8xf32>
    %85 = vector.shape_cast %84 : vector<1x8x8xf32> to vector<8x8xf32>
    %cst_32 = arith.constant dense<0.000000e+00> : vector<8x512xf32>
    %86 = tpu.matmul %85, %83, %cst_32 {dimension_numbers = #tpu.dot_dimension_numbers<[1], [0], [0], [1], [0, 0, 1, 1], [], []>} : vector<8x8xf32>, vector<8x512xf32>, vector<8x512xf32> -> vector<8x512xf32>
    %87 = arith.addf %77, %86 : vector<8x512xf32>
    %88 = vector.broadcast %2 : vector<8x1xf32> to vector<8x512xf32>
    %89 = arith.addf %87, %88 : vector<8x512xf32>
    %cst_33 = arith.constant 0.000000e+00 : f32
    %90 = vector.broadcast %cst_33 : f32 to vector<8x512xf32>
    %91 = arith.maximumf %89, %90 : vector<8x512xf32>
    %c0_34 = arith.constant 0 : index
    %c0_35 = arith.constant 0 : index
    %92 = vector.load %arg7[%c0_34, %c0_35] : memref<8x512xf32, #tpu.memory_space<vmem>>, vector<8x512xf32>
    tpu.vector_store %arg7[%c0_34, %c0_35], %91 {strides = array<i32>} : memref<8x512xf32, #tpu.memory_space<vmem>>, vector<8x512xf32>,
    %c0_36 = arith.constant 0 : index
    %c0_37 = arith.constant 0 : index
    %93 = vector.load %arg6[%c0_36, %c0_37] : memref<16x1xf32, #tpu.memory_space<vmem>>, vector<16x1xf32>
    %cst_38 = arith.constant 0.000000e+00 : f32
    %94 = vector.broadcast %cst_38 : f32 to vector<16x512xf32>
    %95 = vector.extract_strided_slice %91 {offsets = [0, 495], sizes = [8, 17], strides = [1, 1]} : vector<8x512xf32> to vector<8x17xf32>
    %96 = vector.extract_strided_slice %91 {offsets = [0, 0], sizes = [8, 495], strides = [1, 1]} : vector<8x512xf32> to vector<8x495xf32>
    %97 = tpu.concatenate %95, %96 in 1 : vector<8x17xf32>, vector<8x495xf32> -> vector<8x512xf32>
    %98 = vector.extract_strided_slice %1 {offsets = [0, 0], sizes = [1, 512], strides = [1, 1]} : vector<9x512xf32> to vector<1x512xf32>
    %99 = vector.broadcast %98 : vector<1x512xf32> to vector<8x512xf32>
    %100 = arith.mulf %97, %99 : vector<8x512xf32>
    %c0_39 = arith.constant 0 : index
    %c0_40 = arith.constant 0 : index
    %c0_41 = arith.constant 0 : index
    %101 = vector.load %arg5[%c0_39, %c0_40, %c0_41] : memref<9x16x8xf32, #tpu.memory_space<vmem>>, vector<1x16x8xf32>
    %102 = vector.shape_cast %101 : vector<1x16x8xf32> to vector<16x8xf32>
    %cst_42 = arith.constant dense<0.000000e+00> : vector<16x512xf32>
    %103 = tpu.matmul %102, %100, %cst_42 {dimension_numbers = #tpu.dot_dimension_numbers<[1], [0], [0], [1], [0, 0, 1, 1], [], []>} : vector<16x8xf32>, vector<8x512xf32>, vector<16x512xf32> -> vector<16x512xf32>
    %104 = arith.addf %94, %103 : vector<16x512xf32>
    %105 = vector.extract_strided_slice %91 {offsets = [0, 496], sizes = [8, 16], strides = [1, 1]} : vector<8x512xf32> to vector<8x16xf32>
    %106 = vector.extract_strided_slice %91 {offsets = [0, 0], sizes = [8, 496], strides = [1, 1]} : vector<8x512xf32> to vector<8x496xf32>
    %107 = tpu.concatenate %105, %106 in 1 : vector<8x16xf32>, vector<8x496xf32> -> vector<8x512xf32>
    %108 = vector.extract_strided_slice %1 {offsets = [1, 0], sizes = [1, 512], strides = [1, 1]} : vector<9x512xf32> to vector<1x512xf32>
    %109 = vector.broadcast %108 : vector<1x512xf32> to vector<8x512xf32>
    %110 = arith.mulf %107, %109 : vector<8x512xf32>
    %c1_43 = arith.constant 1 : index
    %c0_44 = arith.constant 0 : index
    %c0_45 = arith.constant 0 : index
    %111 = vector.load %arg5[%c1_43, %c0_44, %c0_45] : memref<9x16x8xf32, #tpu.memory_space<vmem>>, vector<1x16x8xf32>
    %112 = vector.shape_cast %111 : vector<1x16x8xf32> to vector<16x8xf32>
    %cst_46 = arith.constant dense<0.000000e+00> : vector<16x512xf32>
    %113 = tpu.matmul %112, %110, %cst_46 {dimension_numbers = #tpu.dot_dimension_numbers<[1], [0], [0], [1], [0, 0, 1, 1], [], []>} : vector<16x8xf32>, vector<8x512xf32>, vector<16x512xf32> -> vector<16x512xf32>
    %114 = arith.addf %104, %113 : vector<16x512xf32>
    %115 = vector.extract_strided_slice %91 {offsets = [0, 497], sizes = [8, 15], strides = [1, 1]} : vector<8x512xf32> to vector<8x15xf32>
    %116 = vector.extract_strided_slice %91 {offsets = [0, 0], sizes = [8, 497], strides = [1, 1]} : vector<8x512xf32> to vector<8x497xf32>
    %117 = tpu.concatenate %115, %116 in 1 : vector<8x15xf32>, vector<8x497xf32> -> vector<8x512xf32>
    %118 = vector.extract_strided_slice %1 {offsets = [2, 0], sizes = [1, 512], strides = [1, 1]} : vector<9x512xf32> to vector<1x512xf32>
    %119 = vector.broadcast %118 : vector<1x512xf32> to vector<8x512xf32>
    %120 = arith.mulf %117, %119 : vector<8x512xf32>
    %c2_47 = arith.constant 2 : index
    %c0_48 = arith.constant 0 : index
    %c0_49 = arith.constant 0 : index
    %121 = vector.load %arg5[%c2_47, %c0_48, %c0_49] : memref<9x16x8xf32, #tpu.memory_space<vmem>>, vector<1x16x8xf32>
    %122 = vector.shape_cast %121 : vector<1x16x8xf32> to vector<16x8xf32>
    %cst_50 = arith.constant dense<0.000000e+00> : vector<16x512xf32>
    %123 = tpu.matmul %122, %120, %cst_50 {dimension_numbers = #tpu.dot_dimension_numbers<[1], [0], [0], [1], [0, 0, 1, 1], [], []>} : vector<16x8xf32>, vector<8x512xf32>, vector<16x512xf32> -> vector<16x512xf32>
    %124 = arith.addf %114, %123 : vector<16x512xf32>
    %125 = vector.extract_strided_slice %91 {offsets = [0, 511], sizes = [8, 1], strides = [1, 1]} : vector<8x512xf32> to vector<8x1xf32>
    %126 = vector.extract_strided_slice %91 {offsets = [0, 0], sizes = [8, 511], strides = [1, 1]} : vector<8x512xf32> to vector<8x511xf32>
    %127 = tpu.concatenate %125, %126 in 1 : vector<8x1xf32>, vector<8x511xf32> -> vector<8x512xf32>
    %128 = vector.extract_strided_slice %1 {offsets = [3, 0], sizes = [1, 512], strides = [1, 1]} : vector<9x512xf32> to vector<1x512xf32>
    %129 = vector.broadcast %128 : vector<1x512xf32> to vector<8x512xf32>
    %130 = arith.mulf %127, %129 : vector<8x512xf32>
    %c3_51 = arith.constant 3 : index
    %c0_52 = arith.constant 0 : index
    %c0_53 = arith.constant 0 : index
    %131 = vector.load %arg5[%c3_51, %c0_52, %c0_53] : memref<9x16x8xf32, #tpu.memory_space<vmem>>, vector<1x16x8xf32>
    %132 = vector.shape_cast %131 : vector<1x16x8xf32> to vector<16x8xf32>
    %cst_54 = arith.constant dense<0.000000e+00> : vector<16x512xf32>
    %133 = tpu.matmul %132, %130, %cst_54 {dimension_numbers = #tpu.dot_dimension_numbers<[1], [0], [0], [1], [0, 0, 1, 1], [], []>} : vector<16x8xf32>, vector<8x512xf32>, vector<16x512xf32> -> vector<16x512xf32>
    %134 = arith.addf %124, %133 : vector<16x512xf32>
    %c4_55 = arith.constant 4 : index
    %c0_56 = arith.constant 0 : index
    %c0_57 = arith.constant 0 : index
    %135 = vector.load %arg5[%c4_55, %c0_56, %c0_57] : memref<9x16x8xf32, #tpu.memory_space<vmem>>, vector<1x16x8xf32>
    %136 = vector.shape_cast %135 : vector<1x16x8xf32> to vector<16x8xf32>
    %cst_58 = arith.constant dense<0.000000e+00> : vector<16x512xf32>
    %137 = tpu.matmul %136, %91, %cst_58 {dimension_numbers = #tpu.dot_dimension_numbers<[1], [0], [0], [1], [0, 0, 1, 1], [], []>} : vector<16x8xf32>, vector<8x512xf32>, vector<16x512xf32> -> vector<16x512xf32>
    %138 = arith.addf %134, %137 : vector<16x512xf32>
    %139 = vector.extract_strided_slice %91 {offsets = [0, 1], sizes = [8, 511], strides = [1, 1]} : vector<8x512xf32> to vector<8x511xf32>
    %140 = vector.extract_strided_slice %91 {offsets = [0, 0], sizes = [8, 1], strides = [1, 1]} : vector<8x512xf32> to vector<8x1xf32>
    %141 = tpu.concatenate %139, %140 in 1 : vector<8x511xf32>, vector<8x1xf32> -> vector<8x512xf32>
    %142 = vector.extract_strided_slice %1 {offsets = [5, 0], sizes = [1, 512], strides = [1, 1]} : vector<9x512xf32> to vector<1x512xf32>
    %143 = vector.broadcast %142 : vector<1x512xf32> to vector<8x512xf32>
    %144 = arith.mulf %141, %143 : vector<8x512xf32>
    %c5_59 = arith.constant 5 : index
    %c0_60 = arith.constant 0 : index
    %c0_61 = arith.constant 0 : index
    %145 = vector.load %arg5[%c5_59, %c0_60, %c0_61] : memref<9x16x8xf32, #tpu.memory_space<vmem>>, vector<1x16x8xf32>
    %146 = vector.shape_cast %145 : vector<1x16x8xf32> to vector<16x8xf32>
    %cst_62 = arith.constant dense<0.000000e+00> : vector<16x512xf32>
    %147 = tpu.matmul %146, %144, %cst_62 {dimension_numbers = #tpu.dot_dimension_numbers<[1], [0], [0], [1], [0, 0, 1, 1], [], []>} : vector<16x8xf32>, vector<8x512xf32>, vector<16x512xf32> -> vector<16x512xf32>
    %148 = arith.addf %138, %147 : vector<16x512xf32>
    %149 = vector.extract_strided_slice %91 {offsets = [0, 15], sizes = [8, 497], strides = [1, 1]} : vector<8x512xf32> to vector<8x497xf32>
    %150 = vector.extract_strided_slice %91 {offsets = [0, 0], sizes = [8, 15], strides = [1, 1]} : vector<8x512xf32> to vector<8x15xf32>
    %151 = tpu.concatenate %149, %150 in 1 : vector<8x497xf32>, vector<8x15xf32> -> vector<8x512xf32>
    %152 = vector.extract_strided_slice %1 {offsets = [6, 0], sizes = [1, 512], strides = [1, 1]} : vector<9x512xf32> to vector<1x512xf32>
    %153 = vector.broadcast %152 : vector<1x512xf32> to vector<8x512xf32>
    %154 = arith.mulf %151, %153 : vector<8x512xf32>
    %c6_63 = arith.constant 6 : index
    %c0_64 = arith.constant 0 : index
    %c0_65 = arith.constant 0 : index
    %155 = vector.load %arg5[%c6_63, %c0_64, %c0_65] : memref<9x16x8xf32, #tpu.memory_space<vmem>>, vector<1x16x8xf32>
    %156 = vector.shape_cast %155 : vector<1x16x8xf32> to vector<16x8xf32>
    %cst_66 = arith.constant dense<0.000000e+00> : vector<16x512xf32>
    %157 = tpu.matmul %156, %154, %cst_66 {dimension_numbers = #tpu.dot_dimension_numbers<[1], [0], [0], [1], [0, 0, 1, 1], [], []>} : vector<16x8xf32>, vector<8x512xf32>, vector<16x512xf32> -> vector<16x512xf32>
    %158 = arith.addf %148, %157 : vector<16x512xf32>
    %159 = vector.extract_strided_slice %91 {offsets = [0, 16], sizes = [8, 496], strides = [1, 1]} : vector<8x512xf32> to vector<8x496xf32>
    %160 = vector.extract_strided_slice %91 {offsets = [0, 0], sizes = [8, 16], strides = [1, 1]} : vector<8x512xf32> to vector<8x16xf32>
    %161 = tpu.concatenate %159, %160 in 1 : vector<8x496xf32>, vector<8x16xf32> -> vector<8x512xf32>
    %162 = vector.extract_strided_slice %1 {offsets = [7, 0], sizes = [1, 512], strides = [1, 1]} : vector<9x512xf32> to vector<1x512xf32>
    %163 = vector.broadcast %162 : vector<1x512xf32> to vector<8x512xf32>
    %164 = arith.mulf %161, %163 : vector<8x512xf32>
    %c7_67 = arith.constant 7 : index
    %c0_68 = arith.constant 0 : index
    %c0_69 = arith.constant 0 : index
    %165 = vector.load %arg5[%c7_67, %c0_68, %c0_69] : memref<9x16x8xf32, #tpu.memory_space<vmem>>, vector<1x16x8xf32>
    %166 = vector.shape_cast %165 : vector<1x16x8xf32> to vector<16x8xf32>
    %cst_70 = arith.constant dense<0.000000e+00> : vector<16x512xf32>
    %167 = tpu.matmul %166, %164, %cst_70 {dimension_numbers = #tpu.dot_dimension_numbers<[1], [0], [0], [1], [0, 0, 1, 1], [], []>} : vector<16x8xf32>, vector<8x512xf32>, vector<16x512xf32> -> vector<16x512xf32>
    %168 = arith.addf %158, %167 : vector<16x512xf32>
    %169 = vector.extract_strided_slice %91 {offsets = [0, 17], sizes = [8, 495], strides = [1, 1]} : vector<8x512xf32> to vector<8x495xf32>
    %170 = vector.extract_strided_slice %91 {offsets = [0, 0], sizes = [8, 17], strides = [1, 1]} : vector<8x512xf32> to vector<8x17xf32>
    %171 = tpu.concatenate %169, %170 in 1 : vector<8x495xf32>, vector<8x17xf32> -> vector<8x512xf32>
    %172 = vector.extract_strided_slice %1 {offsets = [8, 0], sizes = [1, 512], strides = [1, 1]} : vector<9x512xf32> to vector<1x512xf32>
    %173 = vector.broadcast %172 : vector<1x512xf32> to vector<8x512xf32>
    %174 = arith.mulf %171, %173 : vector<8x512xf32>
    %c8_71 = arith.constant 8 : index
    %c0_72 = arith.constant 0 : index
    %c0_73 = arith.constant 0 : index
    %175 = vector.load %arg5[%c8_71, %c0_72, %c0_73] : memref<9x16x8xf32, #tpu.memory_space<vmem>>, vector<1x16x8xf32>
    %176 = vector.shape_cast %175 : vector<1x16x8xf32> to vector<16x8xf32>
    %cst_74 = arith.constant dense<0.000000e+00> : vector<16x512xf32>
    %177 = tpu.matmul %176, %174, %cst_74 {dimension_numbers = #tpu.dot_dimension_numbers<[1], [0], [0], [1], [0, 0, 1, 1], [], []>} : vector<16x8xf32>, vector<8x512xf32>, vector<16x512xf32> -> vector<16x512xf32>
    %178 = arith.addf %168, %177 : vector<16x512xf32>
    %179 = vector.broadcast %93 : vector<16x1xf32> to vector<16x512xf32>
    %180 = arith.addf %178, %179 : vector<16x512xf32>
    %cst_75 = arith.constant 0.000000e+00 : f32
    %181 = vector.broadcast %cst_75 : f32 to vector<16x512xf32>
    %182 = arith.maximumf %180, %181 : vector<16x512xf32>
    %c0_76 = arith.constant 0 : index
    %c0_77 = arith.constant 0 : index
    %183 = vector.load %arg8[%c0_76, %c0_77] : memref<16x512xf32, #tpu.memory_space<vmem>>, vector<16x512xf32>
    tpu.vector_store %arg8[%c0_76, %c0_77], %182 {strides = array<i32>} : memref<16x512xf32, #tpu.memory_space<vmem>>, vector<16x512xf32>,
    return
  }
  func.func @transform_0(%arg0: i32) -> (i32, i32) {
    %c0_i32 = arith.constant 0 : i32
    %c0_i32_0 = arith.constant 0 : i32
    return %c0_i32, %arg0 : i32, i32
  }
  func.func @transform_1(%arg0: i32) -> (i32, i32) {
    %c0_i32 = arith.constant 0 : i32
    %c0_i32_0 = arith.constant 0 : i32
    %c0_i32_1 = arith.constant 0 : i32
    return %c0_i32, %c0_i32_0 : i32, i32
  }
  func.func @transform_2(%arg0: i32) -> (i32, i32, i32) {
    %c0_i32 = arith.constant 0 : i32
    %c0_i32_0 = arith.constant 0 : i32
    %c0_i32_1 = arith.constant 0 : i32
    %c0_i32_2 = arith.constant 0 : i32
    return %c0_i32, %c0_i32_0, %c0_i32_1 : i32, i32, i32
  }
  func.func @transform_3(%arg0: i32) -> (i32, i32) {
    %c0_i32 = arith.constant 0 : i32
    %c0_i32_0 = arith.constant 0 : i32
    %c0_i32_1 = arith.constant 0 : i32
    return %c0_i32, %c0_i32_0 : i32, i32
  }
  func.func @transform_4(%arg0: i32) -> (i32, i32, i32) {
    %c0_i32 = arith.constant 0 : i32
    %c0_i32_0 = arith.constant 0 : i32
    %c0_i32_1 = arith.constant 0 : i32
    %c0_i32_2 = arith.constant 0 : i32
    return %c0_i32, %c0_i32_0, %c0_i32_1 : i32, i32, i32
  }
  func.func @transform_5(%arg0: i32) -> (i32, i32) {
    %c0_i32 = arith.constant 0 : i32
    %c0_i32_0 = arith.constant 0 : i32
    %c0_i32_1 = arith.constant 0 : i32
    return %c0_i32, %c0_i32_0 : i32, i32
  }
  func.func @transform_6(%arg0: i32) -> (i32, i32) {
    %c0_i32 = arith.constant 0 : i32
    %c0_i32_0 = arith.constant 0 : i32
    return %c0_i32, %arg0 : i32, i32
  }
  func.func @transform_7(%arg0: i32) -> (i32, i32) {
    %c0_i32 = arith.constant 0 : i32
    %c0_i32_0 = arith.constant 0 : i32
    return %c0_i32, %arg0 : i32, i32
  }
}

</mosaic_0001>

<bundles_post_ra>
// kernel: _backbone_forward.1
= control target key start
LH: loop header
LB: loop body
LE: loop exit
PB: predicated region body
PF: predicated region fallthrough
CT: control target
= control target key end

     0   :  { %s4138_s24 = smov 0   ;;  %s4140_s25 = smov 0   ;;  %s4831_s0 = inlined_call_operand.vmem [shape: f32[8,1024], index: 0, kind: input, shape index: {}]   ;;  %s4832_s1 = inlined_call_operand.vmem [shape: f32[9,512], index: 1, kind: input, shape index: {}]   ;;  %s4833_s2 = inlined_call_operand.vmem [shape: f32[9,8,8], index: 2, kind: input, shape index: {}]   ;;  %s4834_s3 = inlined_call_operand.vmem [shape: f32[8,1], index: 3, kind: input, shape index: {}]   ;;  %s4835_s4 = inlined_call_operand.vmem [shape: f32[9,16,8], index: 4, kind: input, shape index: {}]   ;;  %s4836_s5 = inlined_call_operand.vmem [shape: f32[16,1], index: 5, kind: input, shape index: {}]   ;;  %s4837_s6 = inlined_call_operand.vmem [shape: f32[8,1024], index: 6, kind: output, shape index: {0}]   ;;  %s4838_s7 = inlined_call_operand.vmem [shape: f32[16,1024], index: 7, kind: output, shape index: {1}]  }
   0x1   :  { %s4142_s26 = smov 0  }
   0x2 LB: > { %s4151_s27 = sadd.s32 4294967295, %s4086_s26   ;;  %s4153_s28 = sadd.s32 1, %s4086_s26   ;;  %s4086_s26 = sphi %s4142_s26, %s4845_s26   ;;  %s4082_s25 = sphi %s4140_s25, %s4844_s25   ;;  %s4078_s24 = sphi %s4138_s24, %s4843_s24  }
   0x3   : > { %s179_s29 = ssub.s32 %s4086_s26, %s4153_s28  ;;  %s182_s30 = sadd.s32 1, %s4082_s25 }
   0x4   : > { %p180_p0 = scmp.eq.s32.totalorder %s179_s29, 0  ;;  %p192_p1 = scmp.ne.s32.totalorder %s4082_s25, %s4078_s24 }
   0x5   : > { %p193_p2 = scmp.eq.s32.totalorder %s4151_s27, 1  ;;  %p3838_p3 = scmp.ge.s32.totalorder %s4086_s26, 1 }
   0x6   : > { %s4161_s8 = scalar_select %p180_p0, %s4082_s25, %s182_s30  }
   0x7   : > { %p4163_p4 = por %p193_p2, %p192_p1  ;;  %p241_p5 = scmp.lt.s32.totalorder %s4086_s26, 3 }
   0x9   : > { %p242_p6 = pnand %p3838_p3, %p241_p5 }
   0xa   : > { %s3840_s10 = sshll.u32 (!%p242_p6), %s4151_s27, 2  ;;  %v4088_v0 = vmov (!%p242_p6), 0.0   ;;  %s4089_s15 = smov (!%p242_p6), 16   ;;  %v4097_v5 = vmov (!%p242_p6), 0   ;;  %v302_v6 = vld [vmem:[%s4834_s3] sm:$0xff] (!%p242_p6)  ;;  %v325_v7 = vlaneseq (!%p242_p6)  ;;  %v4258_v9 = vld [vmem:[%s4832_s1 + $0x18] sm:$0xff] (!%p242_p6) }
   0xb   : > { %245 = sbr.rel (%p242_p6) target bundleno = 848 (0x350), region = 44  ;;  %p278_p7 = scmp.lt.s32.totalorder (!%p242_p6), %s3840_s10, 7  ;;  %454 = vmatprep.mubr.f32.mxu0 (!%p242_p6), %v4088_v0  ;;  %525 = vmatprep.mubr.f32.mxu1 (!%p242_p6), %v4088_v0  ;;  %v4264_v11 = vld [vmem:[%s4832_s1 + $0x8] sm:$0xff] (!%p242_p6)  ;;  %v4269_v12 = vld [vmem:[%s4832_s1] sm:$0xff] (!%p242_p6)  ;;  %v4274_v13 = vld [vmem:[%s4832_s1 + $0x10] sm:$0xff] (!%p242_p6)  ;;  %vm355_vm0 = vcmask (!%p242_p6), 130048  }
   0xc   : > { %s4090_s16 = smov (!%p242_p6), 17   ;;  %s4091_s17 = smov (!%p242_p6), 15   ;;  %4062 = vset.pattern.permute.xlu0 (!%p242_p6), %v4097_v5  ;;  %4063 = vset.pattern.permute.xlu1 (!%p242_p6), %v4097_v5  ;;  %v4253_v8 = vshrl.u32 (!%p242_p6), %v325_v7, 7  ;;  %v3844_v31 = vld [vmem:[%s4833_s2 + $0x8] sm:$0xff] (!%p242_p6)  ;;  %vm386_vm1 = vcmask (!%p242_p6), 64512   ;;  %vm316_vm2 = vcmask (!%p242_p6), 138240  }
   0xd   : > { %s4092_s18 = smov (!%p242_p6), 1   ;;  %s4093_s19 = smov (!%p242_p6), 127   ;;  %v345_v49 = vld [vmem:[%s4833_s2] sm:$0xff] (!%p242_p6)  ;;  %vm686_vm3 = vcmask (!%p242_p6), 121856   ;;  %vm875_vm4 = vcmask (!%p242_p6), 7168   ;;  %vm1214_vm5 = vcmask (!%p242_p6), 1039360  }
   0xe   : > { %s4094_s20 = smov (!%p242_p6), 113   ;;  %s4095_s21 = smov (!%p242_p6), 112   ;;  %v366_v10 = vsub.s32 (!%p242_p6), 1, %v4253_v8  ;;  %v327_v30 = vsub.s32 (!%p242_p6), 0, %v4253_v8  ;;  %v697_v48 = vsub.s32 (!%p242_p6), 2, %v4253_v8  ;;  %v886_v7 = vsub.s32 (!%p242_p6), 3, %v4253_v8 }
   0xf   : > { %s4839_s22 = smov (!%p242_p6), 111   ;;  %vm1403_vm6 = vcmask (!%p242_p6), 924672   ;;  %vm1592_vm7 = vcmask (!%p242_p6), 916480   ;;  %vm1781_vm8 = vcmask (!%p242_p6), 908288  }
  0x10   : > { %v4277_v16 = vrot.slane (!%p242_p6), %v4258_v9, %v366_v10  ;;  %v4280_v17 = vrot.slane (!%p242_p6), %v4264_v11, %v366_v10  ;;  %v4283_v18 = vrot.slane (!%p242_p6), %v4269_v12, %v366_v10  ;;  %v4286_v19 = vrot.slane (!%p242_p6), %v4274_v13, %v366_v10  ;;  %v3849_v10 = vld [vmem:[%s4833_s2 + $0x10] sm:$0xff] (!%p242_p6) }
  0x11   : > { %v4303_v34 = vrot.slane (!%p242_p6), %v4258_v9, %v327_v30  ;;  %v4306_v35 = vrot.slane (!%p242_p6), %v4264_v11, %v327_v30  ;;  %v4309_v36 = vrot.slane (!%p242_p6), %v4274_v13, %v327_v30  ;;  %v4312_v37 = vrot.slane (!%p242_p6), %v4269_v12, %v327_v30 }
  0x12   : > { %s4847_s10 = smov (!%p278_p7, %s3840_s10), 7  ;;  %v4331_v52 = vrot.slane %v4258_v9, %v697_v48  ;;  %v4334_v53 = vrot.slane %v4264_v11, %v697_v48  ;;  %v4337_v54 = vrot.slane %v4274_v13, %v697_v48  ;;  %v4340_v55 = vrot.slane %v4269_v12, %v697_v48 }
  0x13   : > { %s3841_s11 = sshll.u32 %s4847_s10, 3  ;;  %s4842_s10 = smov 111  }
  0x14   : > { %s281_s14 = scalar_lea.vmem %s4831_s0, %s3841_s11  ;;  %s287_s13 = scalar_lea.vmem %s4837_s6, %s3841_s11 }
  0x15   : > { %v4178_v1 = vld [vmem:[%s281_s14 + $0x18] sm:$0xff]  ;;  %v4180_v2 = vld [vmem:[%s281_s14 + $0x8] sm:$0xff]  ;;  %v4186_v3 = vld [vmem:[%s281_s14 + $0x10] sm:$0xff] }
  0x16   : > { %346 = vrot.lane.b32.xlu0 %v4178_v1, %s4089_s15  ;;  %351 = vrot.lane.b32.xlu1 %v4180_v2, %s4089_s15  ;;  %v4188_v4 = vld [vmem:[%s281_s14] sm:$0xff] }
  0x1a   : > { %353 = vrot.lane.b32.xlu1 %v4186_v3, %s4089_s15  ;;  %349 = vrot.lane.b32.xlu0 %v4188_v4, %s4089_s15 }
  0x1e   : > { %310 = vrot.lane.b32.xlu1 %v4188_v4, %s4090_s16  ;;  %304 = vrot.lane.b32.xlu0 %v4178_v1, %s4090_s16 }
  0x22   : > { %314 = vrot.lane.b32.xlu1 %v4186_v3, %s4090_s16  ;;  %312 = vrot.lane.b32.xlu0 %v4180_v2, %s4090_s16 }
  0x26   : > { %680 = vrot.lane.b32.xlu1 %v4188_v4, %s4091_s17  ;;  %677 = vrot.lane.b32.xlu0 %v4178_v1, %s4091_s17 }
  0x2a   : > { %684 = vrot.lane.b32.xlu1 %v4186_v3, %s4091_s17  ;;  %682 = vrot.lane.b32.xlu0 %v4180_v2, %s4091_s17 }
  0x2e   : > { %869 = vrot.lane.b32.xlu1 %v4188_v4, %s4092_s18  ;;  %866 = vrot.lane.b32.xlu0 %v4178_v1, %s4092_s18 }
  0x32   : > { %873 = vrot.lane.b32.xlu1 %v4186_v3, %s4092_s18  ;;  %871 = vrot.lane.b32.xlu0 %v4180_v2, %s4092_s18 }
  0x36   : > { %1206 = vrot.lane.b32.xlu0 %v4188_v4, %s4093_s19  ;;  %1208 = vrot.lane.b32.xlu1 %v4180_v2, %s4093_s19 }
  0x3a   : > { %1210 = vrot.lane.b32.xlu0 %v4186_v3, %s4093_s19  ;;  %1212 = vrot.lane.b32.xlu1 %v4178_v1, %s4093_s19 }
  0x3e   : > { %1395 = vrot.lane.b32.xlu0 %v4188_v4, %s4094_s20  ;;  %1397 = vrot.lane.b32.xlu1 %v4180_v2, %s4094_s20 }
  0x42   : > { %1399 = vrot.lane.b32.xlu0 %v4186_v3, %s4094_s20  ;;  %1401 = vrot.lane.b32.xlu1 %v4178_v1, %s4094_s20 }
  0x46   : > { %1584 = vrot.lane.b32.xlu0 %v4188_v4, %s4095_s21  ;;  %1586 = vrot.lane.b32.xlu1 %v4180_v2, %s4095_s21 }
  0x4a   : > { %1588 = vrot.lane.b32.xlu0 %v4186_v3, %s4095_s21  ;;  %1590 = vrot.lane.b32.xlu1 %v4178_v1, %s4095_s21 }
  0x4e   : > { %1773 = vrot.lane.b32.xlu0 %v4188_v4, %s4839_s22  ;;  %1775 = vrot.lane.b32.xlu1 %v4180_v2, %s4839_s22 }
  0x52   : > { %1777 = vrot.lane.b32.xlu0 %v4186_v3, %s4839_s22  ;;  %1779 = vrot.lane.b32.xlu1 %v4178_v1, %s4839_s22 }
  0x56   : > { %1964 = vperm.xlu0 %4062, %v302_v6  }
  0x88   : > { %v347_v14 = vpop.permute.xlu0 %346  ;;  %v352_v15 = vpop.permute.xlu1 %351 }
  0x8c   : > { %v354_v20 = vpop.permute.xlu1 %353  ;;  %v350_v21 = vpop.permute.xlu0 %349 }
  0x8d   : > { %v357_v22 = vsel %vm355_vm0, %v352_v15, %v354_v20  ;;  %v363_v23 = vsel %vm355_vm0, %v347_v14, %v350_v21  ;;  %v358_v24 = vsel %vm355_vm0, %v354_v20, %v347_v14  ;;  %v356_v25 = vsel %vm355_vm0, %v350_v21, %v352_v15 }
  0x8e   : > { %v383_v26 = vmul.f32 %v4277_v16, %v358_v24  ;;  %v381_v27 = vmul.f32 %v4280_v17, %v356_v25  ;;  %v380_v28 = vmul.f32 %v4283_v18, %v363_v23  ;;  %v382_v29 = vmul.f32 %v4286_v19, %v357_v22 }
  0x8f   : > { %v4359_v20 = vrot.slane %v4258_v9, %v886_v7  ;;  %v4362_v21 = vrot.slane %v4264_v11, %v886_v7  ;;  %v4365_v22 = vrot.slane %v4274_v13, %v886_v7  ;;  %v4368_v23 = vrot.slane %v4269_v12, %v886_v7 }
  0x90   : > { %461 = vmatprep.subr.mxu1 %v383_v26  ;;  %v311_v32 = vpop.permute.xlu1 %310  ;;  %390 = vmatprep.subr.mxu0 %v381_v27  ;;  %v305_v33 = vpop.permute.xlu0 %304 }
  0x91   : > { %391 = vmatpush1.msra.mxu0 %v380_v28  ;;  %462 = vmatpush1.msra.mxu1 %v382_v29  ;;  %v324_v38 = vsel %vm316_vm2, %v305_v33, %v311_v32 }
  0x92   : > { %3845 = vmatmul.mubr.msk.f32.vlgmr.msra.gmra.mrb[0].mxu0 %vm386_vm1, %v3844_v31  ;;  %3846 = vmatmul.mubr.msk.f32.vlgmr.msra.gmra.mrb[0].mxu1 %vm386_vm1, %v3844_v31  ;;  %v341_v47 = vmul.f32 %v4312_v37, %v324_v38 }
  0x93   : > { %599 = vmatprep.mubr.f32.mxu0 %v4088_v0  ;;  %670 = vmatprep.mubr.f32.mxu1 %v4088_v0 }
  0x94   : > { %v315_v39 = vpop.permute.xlu1 %314  ;;  %v313_v40 = vpop.permute.xlu0 %312 }
  0x95   : > { %v319_v41 = vsel %vm316_vm2, %v315_v39, %v305_v33  ;;  %v317_v42 = vsel %vm316_vm2, %v311_v32, %v313_v40  ;;  %v318_v43 = vsel %vm316_vm2, %v313_v40, %v315_v39  ;;  %v1226_v33 = vsub.s32 5, %v4253_v8  ;;  %v3852_v39 = vld [vmem:[%s4833_s2 + $0x18] sm:$0xff] }
  0x96   : > { %v344_v44 = vmul.f32 %v4303_v34, %v319_v41  ;;  %v342_v45 = vmul.f32 %v4306_v35, %v317_v42  ;;  %v343_v46 = vmul.f32 %v4309_v36, %v318_v43 }
  0x97   : > { %v4387_v42 = vrot.slane %v4264_v11, %v1226_v33  ;;  %v4390_v43 = vrot.slane %v4258_v9, %v1226_v33 }
  0x98   : > { %v681_v50 = vpop.permute.xlu1 %680  ;;  %535 = vmatprep.subr.mxu0 %v342_v45  ;;  %606 = vmatprep.subr.mxu1 %v344_v44  ;;  %v678_v51 = vpop.permute.xlu0 %677  ;;  %v4393_v44 = vrot.slane %v4269_v12, %v1226_v33  ;;  %v4396_v45 = vrot.slane %v4274_v13, %v1226_v33 }
  0x99   : > { %536 = vmatpush1.msra.mxu0 %v341_v47  ;;  %607 = vmatpush1.msra.mxu1 %v343_v46  ;;  %v694_v56 = vsel %vm686_vm3, %v678_v51, %v681_v50 }
  0x9a   : > { %3847 = vmatmul.mubr.msk.f32.vlgmr.msra.gmra.mrb[0].mxu0 %vm386_vm1, %v345_v49  ;;  %3848 = vmatmul.mubr.msk.f32.vlgmr.msra.gmra.mrb[0].mxu1 %vm386_vm1, %v345_v49  ;;  %v711_v6 = vmul.f32 %v4340_v55, %v694_v56  ;;  %v1415_v56 = vsub.s32 6, %v4253_v8 }
  0x9b   : > { %784 = vmatprep.mubr.f32.mxu0 %v4088_v0  ;;  %855 = vmatprep.mubr.f32.mxu1 %v4088_v0 }
  0x9c   : > { %v685_v57 = vpop.permute.xlu1 %684  ;;  %v683_v58 = vpop.permute.xlu0 %682 }
  0x9d   : > { %v689_v59 = vsel %vm686_vm3, %v685_v57, %v678_v51  ;;  %v687_v60 = vsel %vm686_vm3, %v681_v50, %v683_v58  ;;  %v688_v61 = vsel %vm686_vm3, %v683_v58, %v685_v57  ;;  %v3855_v58 = vld [vmem:[%s4833_s2 + $0x20] sm:$0xff] }
  0x9e   : > { %v714_v62 = vmul.f32 %v4331_v52, %v689_v59  ;;  %v712_v63 = vmul.f32 %v4334_v53, %v687_v60  ;;  %v713_v5 = vmul.f32 %v4337_v54, %v688_v61  ;;  %v4422_v61 = vrot.slane %v4258_v9, %v1415_v56 }
  0xa0   : > { %v870_v14 = vpop.permute.xlu1 %869  ;;  %720 = vmatprep.subr.mxu0 %v712_v63  ;;  %791 = vmatprep.subr.mxu1 %v714_v62  ;;  %v867_v15 = vpop.permute.xlu0 %866  ;;  %v4425_v62 = vrot.slane %v4269_v12, %v1415_v56  ;;  %v4428_v63 = vrot.slane %v4274_v13, %v1415_v56 }
  0xa1   : > { %721 = vmatpush1.msra.mxu0 %v711_v6  ;;  %792 = vmatpush1.msra.mxu1 %v713_v5  ;;  %v883_v24 = vsel %vm875_vm4, %v867_v15, %v870_v14 }
  0xa2   : > { %3850 = vmatmul.mubr.msk.f32.vlgmr.msra.gmra.mrb[0].mxu0 %vm386_vm1, %v3849_v10  ;;  %3851 = vmatmul.mubr.msk.f32.vlgmr.msra.gmra.mrb[0].mxu1 %vm386_vm1, %v3849_v10  ;;  %v900_v38 = vmul.f32 %v4368_v23, %v883_v24 }
  0xa3   : > { %973 = vmatprep.mubr.f32.mxu0 %v4088_v0  ;;  %1044 = vmatprep.mubr.f32.mxu1 %v4088_v0 }
  0xa4   : > { %v874_v25 = vpop.permute.xlu1 %873  ;;  %v872_v26 = vpop.permute.xlu0 %871 }
  0xa5   : > { %v878_v27 = vsel %vm875_vm4, %v874_v25, %v867_v15  ;;  %v876_v28 = vsel %vm875_vm4, %v870_v14, %v872_v26  ;;  %v877_v29 = vsel %vm875_vm4, %v872_v26, %v874_v25  ;;  %v1604_v26 = vsub.s32 7, %v4253_v8 }
  0xa6   : > { %v903_v30 = vmul.f32 %v4359_v20, %v878_v27  ;;  %v901_v31 = vmul.f32 %v4362_v21, %v876_v28  ;;  %v902_v32 = vmul.f32 %v4365_v22, %v877_v29  ;;  %v3858_v29 = vld [vmem:[%s4833_s2 + $0x28] sm:$0xff] }
  0xa7   : > { %v4450_v8 = vrot.slane %v4258_v9, %v1604_v26  ;;  %v4453_v33 = vrot.slane %v4269_v12, %v1604_v26 }
  0xa8   : > { %909 = vmatprep.subr.mxu0 %v901_v31  ;;  %980 = vmatprep.subr.mxu1 %v903_v30  ;;  %v1207_v40 = vpop.permute.xlu0 %1206  ;;  %v1209_v41 = vpop.permute.xlu1 %1208 }
  0xa9   : > { %910 = vmatpush1.msra.mxu0 %v900_v38  ;;  %981 = vmatpush1.msra.mxu1 %v902_v32  ;;  %v1215_v46 = vsel %vm1214_vm5, %v1207_v40, %v1209_v41  ;;  %v4447_v32 = vrot.slane %v4264_v11, %v1604_v26  ;;  %v4456_v38 = vrot.slane %v4274_v13, %v1604_v26 }
  0xaa   : > { %3853 = vmatmul.mubr.msk.f32.vlgmr.msra.gmra.mrb[0].mxu0 %vm386_vm1, %v3852_v39  ;;  %3854 = vmatmul.mubr.msk.f32.vlgmr.msra.gmra.mrb[0].mxu1 %vm386_vm1, %v3852_v39 }
  0xab   : > { %1060 = vmatprep.subr.mxu0 %v4180_v2  ;;  %1131 = vmatprep.subr.mxu1 %v4178_v1 }
  0xac   : > { %v1211_v47 = vpop.permute.xlu0 %1210  ;;  %v1213_v48 = vpop.permute.xlu1 %1212  ;;  %1061 = vmatpush1.msra.mxu0 %v4188_v4  ;;  %1124 = vmatprep.mubr.f32.mxu0 %v4088_v0  ;;  %v1240_v4 = vmul.f32 %v4393_v44, %v1215_v46 }
  0xad   : > { %v1216_v49 = vsel %vm1214_vm5, %v1209_v41, %v1211_v47  ;;  %v1217_v50 = vsel %vm1214_vm5, %v1211_v47, %v1213_v48  ;;  %v1223_v51 = vsel %vm1214_vm5, %v1213_v48, %v1207_v40  ;;  %1132 = vmatpush1.msra.mxu1 %v4186_v3  ;;  %1195 = vmatprep.mubr.f32.mxu1 %v4088_v0 }
  0xae   : > { %v1241_v1 = vmul.f32 %v4387_v42, %v1216_v49  ;;  %v1243_v2 = vmul.f32 %v4390_v43, %v1223_v51  ;;  %v1242_v57 = vmul.f32 %v4396_v45, %v1217_v50  ;;  %v4419_v3 = vrot.slane %v4264_v11, %v1415_v56  ;;  %v3861_v49 = vld [vmem:[%s4833_s2 + $0x30] sm:$0xff]  ;;  %v4486_v56 = vld [vmem:[%s4832_s1 + $0x20] ss:$0 sm:$0xff] }
  0xb0   : > { %1249 = vmatprep.subr.mxu0 %v1241_v1  ;;  %v1396_v59 = vpop.permute.xlu0 %1395  ;;  %v1398_v60 = vpop.permute.xlu1 %1397  ;;  %1320 = vmatprep.subr.mxu1 %v1243_v2  ;;  %v4476_v1 = vld [vmem:[%s4832_s1 + $0x28] ss:$0 sm:$0xff]  ;;  %v4481_v2 = vld [vmem:[%s4832_s1 + $0x38] ss:$0 sm:$0xff] }
  0xb1   : > { %v1404_v5 = vsel %vm1403_vm6, %v1396_v59, %v1398_v60 }
  0xb2   : > { %3856 = vmatmul.mubr.msk.f32.vlgmr.msra.gmra.mrb[0].mxu0 %vm386_vm1, %v3855_v58  ;;  %3857 = vmatmul.mubr.msk.f32.vlgmr.msra.gmra.mrb[0].mxu1 %vm386_vm1, %v3855_v58  ;;  %v1429_v27 = vmul.f32 %v4425_v62, %v1404_v5  ;;  %v4492_v58 = vld [vmem:[%s4832_s1 + $0x30] ss:$0 sm:$0xff] }
  0xb3   : > { %1250 = vmatpush1.msra.mxu0 %v1240_v4  ;;  %1321 = vmatpush1.msra.mxu1 %v1242_v57 }
  0xb4   : > { %v1400_v6 = vpop.permute.xlu0 %1399  ;;  %v1402_v7 = vpop.permute.xlu1 %1401  ;;  %1313 = vmatprep.mubr.f32.mxu0 %v4088_v0  ;;  %1384 = vmatprep.mubr.f32.mxu1 %v4088_v0 }
  0xb5   : > { %v1405_v10 = vsel %vm1403_vm6, %v1398_v60, %v1400_v6  ;;  %v1406_v14 = vsel %vm1403_vm6, %v1400_v6, %v1402_v7  ;;  %v1412_v15 = vsel %vm1403_vm6, %v1402_v7, %v1396_v59 }
  0xb6   : > { %v1430_v24 = vmul.f32 %v4419_v3, %v1405_v10  ;;  %v1432_v25 = vmul.f32 %v4422_v61, %v1412_v15  ;;  %v1431_v28 = vmul.f32 %v4428_v63, %v1406_v14 }
  0xb8   : > { %1438 = vmatprep.subr.mxu0 %v1430_v24  ;;  %v1585_v30 = vpop.permute.xlu0 %1584  ;;  %v1587_v31 = vpop.permute.xlu1 %1586  ;;  %1509 = vmatprep.subr.mxu1 %v1432_v25  ;;  %v3864_v24 = vld [vmem:[%s4833_s2 + $0x38] sm:$0xff]  ;;  %v3871_v25 = vld [vmem:[%s4833_s2 + $0x40] sm:$0xff] }
  0xb9   : > { %v1593_v39 = vsel %vm1592_vm7, %v1585_v30, %v1587_v31 }
  0xba   : > { %3859 = vmatmul.mubr.msk.f32.vlgmr.msra.gmra.mrb[0].mxu0 %vm386_vm1, %v3858_v29  ;;  %3860 = vmatmul.mubr.msk.f32.vlgmr.msra.gmra.mrb[0].mxu1 %vm386_vm1, %v3858_v29  ;;  %v1618_v47 = vmul.f32 %v4453_v33, %v1593_v39 }
  0xbb   : > { %1439 = vmatpush1.msra.mxu0 %v1429_v27  ;;  %1510 = vmatpush1.msra.mxu1 %v1431_v28 }
  0xbc   : > { %v1589_v40 = vpop.permute.xlu0 %1588  ;;  %v1591_v41 = vpop.permute.xlu1 %1590  ;;  %1502 = vmatprep.mubr.f32.mxu0 %v4088_v0  ;;  %1573 = vmatprep.mubr.f32.mxu1 %v4088_v0 }
  0xbd   : > { %v1594_v11 = vsel %vm1592_vm7, %v1587_v31, %v1589_v40  ;;  %v1595_v9 = vsel %vm1592_vm7, %v1589_v40, %v1591_v41  ;;  %v1601_v12 = vsel %vm1592_vm7, %v1591_v41, %v1585_v30 }
  0xbe   : > { %v1619_v46 = vmul.f32 %v4447_v32, %v1594_v11  ;;  %v1621_v13 = vmul.f32 %v4450_v8, %v1601_v12  ;;  %v1620_v48 = vmul.f32 %v4456_v38, %v1595_v9 }
  0xc0   : > { %1627 = vmatprep.subr.mxu0 %v1619_v46  ;;  %v1774_v50 = vpop.permute.xlu0 %1773  ;;  %v1776_v51 = vpop.permute.xlu1 %1775  ;;  %1698 = vmatprep.subr.mxu1 %v1621_v13  ;;  %v1979_v13 = vld [vmem:[%s4836_s5] sm:$0xff] }
  0xc1   : > { %v1782_v4 = vsel %vm1781_vm8, %v1774_v50, %v1776_v51 }
  0xc2   : > { %3862 = vmatmul.mubr.msk.f32.vlgmr.msra.gmra.mrb[0].mxu0 %vm386_vm1, %v3861_v49  ;;  %3863 = vmatmul.mubr.msk.f32.vlgmr.msra.gmra.mrb[0].mxu1 %vm386_vm1, %v3861_v49  ;;  %v1807_v14 = vmul.f32 %v4486_v56, %v1782_v4 }
  0xc3   : > { %1628 = vmatpush1.msra.mxu0 %v1618_v47  ;;  %1699 = vmatpush1.msra.mxu1 %v1620_v48  ;;  %v1980_v47 = vld [vmem:[%s4836_s5 + $0x8] sm:$0xff] }
  0xc4   : > { %v1778_v57 = vpop.permute.xlu0 %1777  ;;  %v1780_v59 = vpop.permute.xlu1 %1779  ;;  %1691 = vmatprep.mubr.f32.mxu0 %v4088_v0  ;;  %1762 = vmatprep.mubr.f32.mxu1 %v4088_v0 }
  0xc5   : > { %v1783_v60 = vsel %vm1781_vm8, %v1776_v51, %v1778_v57  ;;  %v1784_v5 = vsel %vm1781_vm8, %v1778_v57, %v1780_v59  ;;  %v1790_v6 = vsel %vm1781_vm8, %v1780_v59, %v1774_v50 }
  0xc6   : > { %v1808_v7 = vmul.f32 %v4476_v1, %v1783_v60  ;;  %v1810_v10 = vmul.f32 %v4481_v2, %v1790_v6  ;;  %v1809_v15 = vmul.f32 %v4492_v58, %v1784_v5 }
  0xc8   : > { %1816 = vmatprep.subr.mxu0 %v1808_v7  ;;  %1887 = vmatprep.subr.mxu1 %v1810_v10 }
  0xca   : > { %3865 = vmatmul.mubr.msk.f32.vlgmr.msra.gmra.mrb[0].mxu0 %vm386_vm1, %v3864_v24  ;;  %3866 = vmatmul.mubr.msk.f32.vlgmr.msra.gmra.mrb[0].mxu1 %vm386_vm1, %v3864_v24 }
  0xcb   : > { %1817 = vmatpush1.msra.mxu0 %v1807_v14  ;;  %1888 = vmatpush1.msra.mxu1 %v1809_v15  ;;  %v3874_v15 = vld [vmem:[%s4835_s4 + $0x10] sm:$0xff] }
  0xcc   : > { %1880 = vmatprep.mubr.f32.mxu0 %v4088_v0  ;;  %1951 = vmatprep.mubr.f32.mxu1 %v4088_v0 }
  0xd2   : > { %3872 = vmatmul.mubr.msk.f32.vlgmr.msra.gmra.mrb[0].mxu0 %vm386_vm1, %v3871_v25  ;;  %3873 = vmatmul.mubr.msk.f32.vlgmr.msra.gmra.mrb[0].mxu1 %vm386_vm1, %v3871_v25 }
  0xd3   : > { %2102 = vmatprep.mubr.f32.mxu0 %v4088_v0  ;;  %2179 = vmatprep.mubr.f32.mxu1 %v4088_v0 }
  0xd5   : > { %v1965_v26 = vpop.permute.xlu0 %1964 }
 0x1a5   : > { %v1882_v27 = vpop.f32.mrb[0].mxu0  ;;  %v1953_v28 = vpop.f32.mrb[0].mxu1 }
 0x1a6   : > { %v1967_v29 = vadd.f32 %v1965_v26, %v1882_v27  ;;  %v1969_v30 = vadd.f32 %v1965_v26, %v1953_v28  ;;  %v1884_v31 = vpop.f32.mrb[1].mxu0  ;;  %v1955_v39 = vpop.f32.mrb[1].mxu1 }
 0x1a7   : > { %v1968_v40 = vadd.f32 %v1965_v26, %v1884_v31  ;;  %v1970_v41 = vadd.f32 %v1965_v26, %v1955_v39  ;;  %v2006_v39 = vld [vmem:[%s4835_s4] sm:$0xff] }
 0x1a8   : > { %v4522_v11 = vmax.f32 %v1967_v29, 0.0  ;;  %v4526_v12 = vmax.f32 %v1969_v30, 0.0 }
 0x1a9   : > { %v4524_v9 = vmax.f32 %v1968_v40, 0.0  ;;  %v4532_v46 = vmax.f32 %v1970_v41, 0.0 }
 0x1aa   : > { %1975 = vst [vmem:[%s287_s13] sm:$0xff] %v4522_v11  ;;  %2011 = vrot.lane.b32.xlu1 %v4522_v11, %s4089_s15  ;;  %1977 = vst [vmem:[%s287_s13 + $0x10] sm:$0xff] %v4526_v12 }
 0x1ab   : > { %1976 = vst [vmem:[%s287_s13 + $0x8] sm:$0xff] %v4524_v9  ;;  %2013 = vrot.lane.b32.xlu0 %v4524_v9, %s4089_s15  ;;  %1978 = vst [vmem:[%s287_s13 + $0x18] sm:$0xff] %v4532_v46 }
 0x1ae   : > { %2015 = vrot.lane.b32.xlu1 %v4526_v12, %s4089_s15 }
 0x1af   : > { %1982 = vrot.lane.b32.xlu0 %v4532_v46, %s4090_s16 }
 0x1b2   : > { %2008 = vrot.lane.b32.xlu1 %v4532_v46, %s4089_s15 }
 0x1b3   : > { %1990 = vrot.lane.b32.xlu0 %v4524_v9, %s4090_s16 }
 0x1b6   : > { %1988 = vrot.lane.b32.xlu1 %v4522_v11, %s4090_s16 }
 0x1b7   : > { %2352 = vrot.lane.b32.xlu0 %v4532_v46, %s4091_s17 }
 0x1ba   : > { %1992 = vrot.lane.b32.xlu1 %v4526_v12, %s4090_s16 }
 0x1bb   : > { %2357 = vrot.lane.b32.xlu0 %v4524_v9, %s4091_s17 }
 0x1be   : > { %2355 = vrot.lane.b32.xlu1 %v4522_v11, %s4091_s17 }
 0x1bf   : > { %2544 = vrot.lane.b32.xlu0 %v4532_v46, %s4092_s18 }
 0x1c2   : > { %2359 = vrot.lane.b32.xlu1 %v4526_v12, %s4091_s17 }
 0x1c3   : > { %2549 = vrot.lane.b32.xlu0 %v4524_v9, %s4092_s18 }
 0x1c6   : > { %2547 = vrot.lane.b32.xlu1 %v4522_v11, %s4092_s18 }
 0x1c7   : > { %2907 = vrot.lane.b32.xlu0 %v4522_v11, %s4093_s19 }
 0x1ca   : > { %2551 = vrot.lane.b32.xlu1 %v4526_v12, %s4092_s18 }
 0x1cb   : > { %2911 = vrot.lane.b32.xlu0 %v4526_v12, %s4093_s19 }
 0x1ce   : > { %2909 = vrot.lane.b32.xlu1 %v4524_v9, %s4093_s19 }
 0x1cf   : > { %3099 = vrot.lane.b32.xlu0 %v4522_v11, %s4094_s20 }
 0x1d2   : > { %2913 = vrot.lane.b32.xlu1 %v4532_v46, %s4093_s19 }
 0x1d3   : > { %3103 = vrot.lane.b32.xlu0 %v4526_v12, %s4094_s20 }
 0x1d6   : > { %3101 = vrot.lane.b32.xlu1 %v4524_v9, %s4094_s20 }
 0x1d7   : > { %3291 = vrot.lane.b32.xlu0 %v4522_v11, %s4095_s21 }
 0x1da   : > { %3105 = vrot.lane.b32.xlu1 %v4532_v46, %s4094_s20  ;;  %s274_s20 = sand.u32 1, %s4078_s24   ;;  %s3931_s24 = sshll.u32 (%p4163_p4), %s4151_s27, 5 }
 0x1db   : > { %3295 = vrot.lane.b32.xlu0 %v4526_v12, %s4095_s21  ;;  %s3727_s22 = scalar_lea.vmem (%p4163_p4), %s4838_s7, %s3931_s24 }
 0x1de   : > { %3293 = vrot.lane.b32.xlu1 %v4524_v9, %s4095_s21 }
 0x1df   : > { %3483 = vrot.lane.b32.xlu0 %v4522_v11, %s4842_s10 }
 0x1e2   : > { %3297 = vrot.lane.b32.xlu1 %v4532_v46, %s4095_s21  ;;  %s3839_s21 = sshll.u32 %s274_s20, 6 }
 0x1e3   : > { %3487 = vrot.lane.b32.xlu0 %v4526_v12, %s4842_s10  ;;  %s4797_s14 = scalar_lea.vmem [#allocation2], %s3839_s21 }
 0x1e6   : > { %3485 = vrot.lane.b32.xlu1 %v4524_v9, %s4842_s10 }
 0x1e7   : > { %3677 = vperm.xlu0 %4062, %v1979_v13  }
 0x1ea   : > { %3489 = vrot.lane.b32.xlu1 %v4532_v46, %s4842_s10 }
 0x1ee   : > { %3682 = vperm.xlu1 %4063, %v1980_v47  }
 0x21c   : > { %v2012_v48 = vpop.permute.xlu1 %2011 }
 0x21d   : > { %v2014_v49 = vpop.permute.xlu0 %2013 }
 0x21e   : > { %v2017_v50 = vsel %vm355_vm0, %v2012_v48, %v2014_v49 }
 0x21f   : > { %v2026_v51 = vmul.f32 %v2017_v50, %v4280_v17 }
 0x220   : > { %v2016_v4 = vpop.permute.xlu1 %2015 }
 0x221   : > { %v1983_v57 = vpop.permute.xlu0 %1982  ;;  %2038 = vmatprep.subr.mxu0 %v2026_v51  ;;  %v2018_v59 = vsel %vm355_vm0, %v2014_v49, %v2016_v4 }
 0x222   : > { %v2027_v17 = vmul.f32 %v2018_v59, %v4286_v19  ;;  %v3875_v19 = vld [vmem:[%s4835_s4 + $0x18] sm:$0xff] }
 0x224   : > { %v2009_v60 = vpop.permute.xlu1 %2008 }
 0x225   : > { %v2019_v5 = vsel %vm355_vm0, %v2016_v4, %v2009_v60  ;;  %v2024_v6 = vsel %vm355_vm0, %v2009_v60, %v2012_v48  ;;  %v1991_v7 = vpop.permute.xlu0 %1990  ;;  %v2007_v48 = vld [vmem:[%s4835_s4 + $0x8] sm:$0xff] }
 0x226   : > { %v2025_v10 = vmul.f32 %v2024_v6, %v4283_v18  ;;  %v2028_v14 = vmul.f32 %v2019_v5, %v4277_v16 }
 0x228   : > { %2039 = vmatpush1.msra.mxu0 %v2025_v10  ;;  %2115 = vmatprep.subr.mxu1 %v2028_v14  ;;  %v1989_v24 = vpop.permute.xlu1 %1988 }
 0x229   : > { %v1994_v25 = vsel %vm316_vm2, %v1989_v24, %v1991_v7  ;;  %v2001_v26 = vsel %vm316_vm2, %v1983_v57, %v1989_v24  ;;  %v2353_v27 = vpop.permute.xlu0 %2352  ;;  %3876 = vmatmul.mubr.msk.f32.vlgmr.msra.gmra.mrb[2].mxu0 %vm386_vm1, %v3874_v15  ;;  %2116 = vmatpush1.msra.mxu1 %v2027_v17  ;;  %v3890_v24 = vld [vmem:[%s4835_s4 + $0x30] sm:$0xff] }
 0x22a   : > { %v2002_v18 = vmul.f32 %v2001_v26, %v4312_v37  ;;  %v2003_v16 = vmul.f32 %v1994_v25, %v4306_v35  ;;  %3878 = vmatmul.mubr.msk.f32.vlgmr.msra.gmra.mrb[2].mxu1 %vm386_vm1, %v3874_v15  ;;  %2108 = vmatprep.mubr.f32.mxu0 %v4088_v0 }
 0x22b   : > { %2185 = vmatprep.mubr.f32.mxu1 %v4088_v0 }
 0x22c   : > { %2198 = vmatprep.subr.mxu0 %v2003_v16  ;;  %v1993_v28 = vpop.permute.xlu1 %1992 }
 0x22d   : > { %v1995_v29 = vsel %vm316_vm2, %v1991_v7, %v1993_v28  ;;  %v1996_v30 = vsel %vm316_vm2, %v1993_v28, %v1983_v57  ;;  %v2358_v31 = vpop.permute.xlu0 %2357  ;;  %3877 = vmatmul.mubr.msk.f32.gmra.mrb[4].mxu0 %vm386_vm1, %v3875_v19  ;;  %v3884_v57 = vld [vmem:[%s4835_s4 + $0x20] sm:$0xff]  ;;  %v3885_v7 = vld [vmem:[%s4835_s4 + $0x28] sm:$0xff] }
 0x22e   : > { %v2004_v35 = vmul.f32 %v1995_v29, %v4309_v36  ;;  %v2005_v37 = vmul.f32 %v1996_v30, %v4303_v34  ;;  %2199 = vmatpush1.msra.mxu0 %v2002_v18  ;;  %3879 = vmatmul.mubr.msk.f32.gmra.mrb[4].mxu1 %vm386_vm1, %v3875_v19 }
 0x22f   : > { %2262 = vmatprep.mubr.f32.mxu0 %v4088_v0  ;;  %2339 = vmatprep.mubr.f32.mxu1 %v4088_v0 }
 0x230   : > { %2275 = vmatprep.subr.mxu1 %v2005_v37  ;;  %v2356_v40 = vpop.permute.xlu1 %2355 }
 0x231   : > { %v2361_v41 = vsel %vm686_vm3, %v2356_v40, %v2358_v31  ;;  %v2368_v13 = vsel %vm686_vm3, %v2353_v27, %v2356_v40  ;;  %v2545_v36 = vpop.permute.xlu0 %2544  ;;  %3880 = vmatmul.mubr.msk.f32.vlgmr.msra.gmra.mrb[2].mxu0 %vm386_vm1, %v2006_v39  ;;  %2276 = vmatpush1.msra.mxu1 %v2004_v35  ;;  %v3897_v35 = vld [vmem:[%s4835_s4 + $0x48] sm:$0xff] }
 0x232   : > { %v2369_v34 = vmul.f32 %v2368_v13, %v4340_v55  ;;  %v2370_v47 = vmul.f32 %v2361_v41, %v4334_v53  ;;  %3882 = vmatmul.mubr.msk.f32.vlgmr.msra.gmra.mrb[2].mxu1 %vm386_vm1, %v2006_v39  ;;  %2268 = vmatprep.mubr.f32.mxu0 %v4088_v0  ;;  %v3902_v41 = vld [vmem:[%s4835_s4 + $0x50] sm:$0xff] }
 0x233   : > { %2345 = vmatprep.mubr.f32.mxu1 %v4088_v0 }
 0x234   : > { %2382 = vmatprep.subr.mxu0 %v2370_v47  ;;  %v2360_v49 = vpop.permute.xlu1 %2359 }
 0x235   : > { %v2362_v50 = vsel %vm686_vm3, %v2358_v31, %v2360_v49  ;;  %v2363_v51 = vsel %vm686_vm3, %v2360_v49, %v2353_v27  ;;  %v2550_v4 = vpop.permute.xlu0 %2549  ;;  %3881 = vmatmul.mubr.msk.f32.gmra.mrb[4].mxu0 %vm386_vm1, %v2007_v48  ;;  %v3903_v49 = vld [vmem:[%s4835_s4 + $0x58] sm:$0xff] }
 0x236   : > { %v2371_v53 = vmul.f32 %v2362_v50, %v4337_v54  ;;  %v2372_v55 = vmul.f32 %v2363_v51, %v4331_v52  ;;  %2383 = vmatpush1.msra.mxu0 %v2369_v34  ;;  %3883 = vmatmul.mubr.msk.f32.gmra.mrb[4].mxu1 %vm386_vm1, %v2007_v48 }
 0x237   : > { %2446 = vmatprep.mubr.f32.mxu0 %v4088_v0  ;;  %2523 = vmatprep.mubr.f32.mxu1 %v4088_v0 }
 0x238   : > { %2459 = vmatprep.subr.mxu1 %v2372_v55  ;;  %v2548_v59 = vpop.permute.xlu1 %2547 }
 0x239   : > { %v2553_v60 = vsel %vm875_vm4, %v2548_v59, %v2550_v4  ;;  %v2560_v5 = vsel %vm875_vm4, %v2545_v36, %v2548_v59  ;;  %v2908_v54 = vpop.permute.xlu0 %2907  ;;  %3886 = vmatmul.mubr.msk.f32.vlgmr.msra.gmra.mrb[2].mxu0 %vm386_vm1, %v3884_v57  ;;  %2460 = vmatpush1.msra.mxu1 %v2371_v53 }
 0x23a   : > { %v2561_v52 = vmul.f32 %v2560_v5, %v4368_v23  ;;  %v2562_v6 = vmul.f32 %v2553_v60, %v4362_v21  ;;  %3888 = vmatmul.mubr.msk.f32.vlgmr.msra.gmra.mrb[2].mxu1 %vm386_vm1, %v3884_v57  ;;  %2452 = vmatprep.mubr.f32.mxu0 %v4088_v0  ;;  %v3909_v5 = vld [vmem:[%s4835_s4 + $0x68] sm:$0xff] }
 0x23b   : > { %2529 = vmatprep.mubr.f32.mxu1 %v4088_v0 }
 0x23c   : > { %2574 = vmatprep.subr.mxu0 %v2562_v6  ;;  %v2552_v10 = vpop.permute.xlu1 %2551  ;;  %v3914_v6 = vld [vmem:[%s4835_s4 + $0x70] sm:$0xff] }
 0x23d   : > { %v2554_v14 = vsel %vm875_vm4, %v2550_v4, %v2552_v10  ;;  %v2555_v15 = vsel %vm875_vm4, %v2552_v10, %v2545_v36  ;;  %v2912_v17 = vpop.permute.xlu0 %2911  ;;  %3887 = vmatmul.mubr.msk.f32.gmra.mrb[4].mxu0 %vm386_vm1, %v3885_v7  ;;  %v3908_v4 = vld [vmem:[%s4835_s4 + $0x60] sm:$0xff] }
 0x23e   : > { %v2563_v21 = vmul.f32 %v2554_v14, %v4365_v22  ;;  %v2564_v23 = vmul.f32 %v2555_v15, %v4359_v20  ;;  %2575 = vmatpush1.msra.mxu0 %v2561_v52  ;;  %3889 = vmatmul.mubr.msk.f32.gmra.mrb[4].mxu1 %vm386_vm1, %v3885_v7 }
 0x23f   : > { %2745 = vmatprep.subr.mxu0 %v4524_v9  ;;  %2638 = vmatprep.mubr.f32.mxu0 %v4088_v0  ;;  %v3891_v9 = vld [vmem:[%s4835_s4 + $0x38] sm:$0xff] }
 0x240   : > { %2651 = vmatprep.subr.mxu1 %v2564_v23  ;;  %v2910_v25 = vpop.permute.xlu1 %2909  ;;  %2715 = vmatprep.mubr.f32.mxu1 %v4088_v0 }
 0x241   : > { %v2916_v26 = vsel %vm1214_vm5, %v2910_v25, %v2912_v17  ;;  %v3100_v22 = vpop.permute.xlu0 %3099  ;;  %3892 = vmatmul.mubr.msk.f32.vlgmr.msra.gmra.mrb[2].mxu0 %vm386_vm1, %v3890_v24  ;;  %2652 = vmatpush1.msra.mxu1 %v2563_v21  ;;  %v2915_v18 = vsel %vm1214_vm5, %v2908_v54, %v2910_v25 }
 0x242   : > { %v2925_v20 = vmul.f32 %v2916_v26, %v4387_v42  ;;  %2746 = vmatpush1.msra.mxu0 %v4522_v11  ;;  %3894 = vmatmul.mubr.msk.f32.vlgmr.msra.gmra.mrb[2].mxu1 %vm386_vm1, %v3890_v24 }
 0x243   : > { %2822 = vmatprep.subr.mxu1 %v4532_v46  ;;  %2644 = vmatprep.mubr.f32.mxu0 %v4088_v0  ;;  %v2924_v46 = vmul.f32 %v2915_v18, %v4393_v44 }
 0x244   : > { %2823 = vmatpush1.msra.mxu1 %v4526_v12  ;;  %2937 = vmatprep.subr.mxu0 %v2925_v20  ;;  %v2914_v27 = vpop.permute.xlu1 %2913  ;;  %v3896_v12 = vld [vmem:[%s4835_s4 + $0x40] sm:$0xff] }
 0x245   : > { %v2923_v42 = vsel %vm1214_vm5, %v2914_v27, %v2908_v54  ;;  %v3104_v16 = vpop.permute.xlu0 %3103  ;;  %3893 = vmatmul.mubr.msk.f32.gmra.mrb[4].mxu0 %vm386_vm1, %v3891_v9  ;;  %2721 = vmatprep.mubr.f32.mxu1 %v4088_v0  ;;  %v2917_v11 = vsel %vm1214_vm5, %v2912_v17, %v2914_v27 }
 0x246   : > { %v2927_v19 = vmul.f32 %v2923_v42, %v4390_v43  ;;  %3895 = vmatmul.mubr.msk.f32.gmra.mrb[4].mxu1 %vm386_vm1, %v3891_v9  ;;  %2809 = vmatprep.mubr.f32.mxu0 %v4088_v0  ;;  %v2926_v29 = vmul.f32 %v2917_v11, %v4396_v45 }
 0x247   : > { %2886 = vmatprep.mubr.f32.mxu1 %v4088_v0 }
 0x248   : > { %3014 = vmatprep.subr.mxu1 %v2927_v19  ;;  %v3102_v28 = vpop.permute.xlu1 %3101 }
 0x249   : > { %v3108_v30 = vsel %vm1403_vm6, %v3102_v28, %v3104_v16  ;;  %v3292_v31 = vpop.permute.xlu0 %3291  ;;  %3898 = vmatmul.mubr.msk.f32.vlgmr.msra.gmra.mrb[2].mxu0 %vm386_vm1, %v3896_v12  ;;  %v3107_v45 = vsel %vm1403_vm6, %v3100_v22, %v3102_v28 }
 0x24a   : > { %v3117_v43 = vmul.f32 %v3108_v30, %v4419_v3  ;;  %2938 = vmatpush1.msra.mxu0 %v2924_v46  ;;  %3900 = vmatmul.mubr.msk.f32.vlgmr.msra.gmra.mrb[2].mxu1 %vm386_vm1, %v3896_v12  ;;  %v3116_v13 = vmul.f32 %v3107_v45, %v4425_v62 }
 0x24b   : > { %3015 = vmatpush1.msra.mxu1 %v2926_v29  ;;  %2815 = vmatprep.mubr.f32.mxu0 %v4088_v0 }
 0x24c   : > { %3129 = vmatprep.subr.mxu0 %v3117_v43  ;;  %v3106_v44 = vpop.permute.xlu1 %3105  ;;  %2892 = vmatprep.mubr.f32.mxu1 %v4088_v0 }
 0x24d   : > { %v3115_v37 = vsel %vm1403_vm6, %v3106_v44, %v3100_v22  ;;  %v3296_v39 = vpop.permute.xlu0 %3295  ;;  %3899 = vmatmul.mubr.msk.f32.gmra.mrb[4].mxu0 %vm386_vm1, %v3897_v35  ;;  %v3109_v3 = vsel %vm1403_vm6, %v3104_v16, %v3106_v44 }
 0x24e   : > { %v3119_v40 = vmul.f32 %v3115_v37, %v4422_v61  ;;  %3901 = vmatmul.mubr.msk.f32.gmra.mrb[4].mxu1 %vm386_vm1, %v3897_v35  ;;  %3001 = vmatprep.mubr.f32.mxu0 %v4088_v0  ;;  %v3118_v34 = vmul.f32 %v3109_v3, %v4428_v63 }
 0x24f   : > { %3078 = vmatprep.mubr.f32.mxu1 %v4088_v0 }
 0x250   : > { %3206 = vmatprep.subr.mxu1 %v3119_v40  ;;  %v3294_v36 = vpop.permute.xlu1 %3293 }
 0x251   : > { %v3300_v47 = vsel %vm1592_vm7, %v3294_v36, %v3296_v39  ;;  %3904 = vmatmul.mubr.msk.f32.vlgmr.msra.gmra.mrb[2].mxu0 %vm386_vm1, %v3902_v41  ;;  %v3484_v48 = vpop.permute.xlu0 %3483  ;;  %v3299_v63 = vsel %vm1592_vm7, %v3292_v31, %v3294_v36 }
 0x252   : > { %v3309_v61 = vmul.f32 %v3300_v47, %v4447_v32  ;;  %3130 = vmatpush1.msra.mxu0 %v3116_v13  ;;  %3906 = vmatmul.mubr.msk.f32.vlgmr.msra.gmra.mrb[2].mxu1 %vm386_vm1, %v3902_v41  ;;  %v3308_v53 = vmul.f32 %v3299_v63, %v4453_v33 }
 0x253   : > { %3207 = vmatpush1.msra.mxu1 %v3118_v34  ;;  %3007 = vmatprep.mubr.f32.mxu0 %v4088_v0 }
 0x254   : > { %3321 = vmatprep.subr.mxu0 %v3309_v61  ;;  %v3298_v62 = vpop.permute.xlu1 %3297  ;;  %3084 = vmatprep.mubr.f32.mxu1 %v4088_v0 }
 0x255   : > { %v3307_v50 = vsel %vm1592_vm7, %v3298_v62, %v3292_v31  ;;  %3905 = vmatmul.mubr.msk.f32.gmra.mrb[4].mxu0 %vm386_vm1, %v3903_v49  ;;  %v3301_v32 = vsel %vm1592_vm7, %v3296_v39, %v3298_v62  ;;  %v3488_v55 = vpop.permute.xlu0 %3487 }
 0x256   : > { %v3311_v51 = vmul.f32 %v3307_v50, %v4450_v8  ;;  %3907 = vmatmul.mubr.msk.f32.gmra.mrb[4].mxu1 %vm386_vm1, %v3903_v49  ;;  %3193 = vmatprep.mubr.f32.mxu0 %v4088_v0  ;;  %v3310_v59 = vmul.f32 %v3301_v32, %v4456_v38 }
 0x257   : > { %3270 = vmatprep.mubr.f32.mxu1 %v4088_v0 }
 0x258   : > { %3398 = vmatprep.subr.mxu1 %v3311_v51  ;;  %v3486_v57 = vpop.permute.xlu1 %3485 }
 0x259   : > { %v3492_v60 = vsel %vm1781_vm8, %v3486_v57, %v3488_v55  ;;  %3910 = vmatmul.mubr.msk.f32.vlgmr.msra.gmra.mrb[2].mxu0 %vm386_vm1, %v3908_v4  ;;  %v3491_v38 = vsel %vm1781_vm8, %v3484_v48, %v3486_v57 }
 0x25a   : > { %v3501_v8 = vmul.f32 %v4476_v1, %v3492_v60  ;;  %3322 = vmatpush1.msra.mxu0 %v3308_v53  ;;  %3912 = vmatmul.mubr.msk.f32.vlgmr.msra.gmra.mrb[2].mxu1 %vm386_vm1, %v3908_v4  ;;  %v3500_v7 = vmul.f32 %v4486_v56, %v3491_v38  ;;  %v3920_v56 = vld [vmem:[%s4835_s4 + $0x80] sm:$0xff] }
 0x25b   : > { %3399 = vmatpush1.msra.mxu1 %v3310_v59  ;;  %3199 = vmatprep.mubr.f32.mxu0 %v4088_v0 }
 0x25c   : > { %3513 = vmatprep.subr.mxu0 %v3501_v8  ;;  %v3490_v33 = vpop.permute.xlu1 %3489  ;;  %3276 = vmatprep.mubr.f32.mxu1 %v4088_v0 }
 0x25d   : > { %v3499_v54 = vsel %vm1781_vm8, %v3490_v33, %v3484_v48  ;;  %3911 = vmatmul.mubr.msk.f32.gmra.mrb[4].mxu0 %vm386_vm1, %v3909_v5  ;;  %v3493_v1 = vsel %vm1781_vm8, %v3488_v55, %v3490_v33 }
 0x25e   : > { %v3503_v52 = vmul.f32 %v4481_v2, %v3499_v54  ;;  %3913 = vmatmul.mubr.msk.f32.gmra.mrb[4].mxu1 %vm386_vm1, %v3909_v5  ;;  %3385 = vmatprep.mubr.f32.mxu0 %v4088_v0  ;;  %v3502_v10 = vmul.f32 %v4492_v58, %v3493_v1  ;;  %v3915_v2 = vld [vmem:[%s4835_s4 + $0x78] sm:$0xff]  ;;  %v3921_v58 = vld [vmem:[%s4835_s4 + $0x88] sm:$0xff] }
 0x25f   : > { %3462 = vmatprep.mubr.f32.mxu1 %v4088_v0 }
 0x260   : > { %3590 = vmatprep.subr.mxu1 %v3503_v52 }
 0x261   : > { %3916 = vmatmul.mubr.msk.f32.vlgmr.msra.gmra.mrb[2].mxu0 %vm386_vm1, %v3914_v6 }
 0x262   : > { %3514 = vmatpush1.msra.mxu0 %v3500_v7  ;;  %3918 = vmatmul.mubr.msk.f32.vlgmr.msra.gmra.mrb[2].mxu1 %vm386_vm1, %v3914_v6 }
 0x263   : > { %3591 = vmatpush1.msra.mxu1 %v3502_v10  ;;  %3391 = vmatprep.mubr.f32.mxu0 %v4088_v0 }
 0x264   : > { %3468 = vmatprep.mubr.f32.mxu1 %v4088_v0 }
 0x265   : > { %3917 = vmatmul.mubr.msk.f32.gmra.mrb[4].mxu0 %vm386_vm1, %v3915_v2 }
 0x266   : > { %3919 = vmatmul.mubr.msk.f32.gmra.mrb[4].mxu1 %vm386_vm1, %v3915_v2  ;;  %3577 = vmatprep.mubr.f32.mxu0 %v4088_v0  ;;  %v3678_v14 = vpop.permute.xlu0 %3677 }
 0x267   : > { %3654 = vmatprep.mubr.f32.mxu1 %v4088_v0 }
 0x269   : > { %3922 = vmatmul.mubr.msk.f32.vlgmr.msra.gmra.mrb[2].mxu0 %vm386_vm1, %v3920_v56 }
 0x26a   : > { %3924 = vmatmul.mubr.msk.f32.vlgmr.msra.gmra.mrb[2].mxu1 %vm386_vm1, %v3920_v56  ;;  %3583 = vmatprep.mubr.f32.mxu0 %v4088_v0 }
 0x26b   : > { %3660 = vmatprep.mubr.f32.mxu1 %v4088_v0 }
 0x26d   : > { %3923 = vmatmul.mubr.msk.f32.gmra.mrb[4].mxu0 %vm386_vm1, %v3921_v58  ;;  %v3683_v22 = vpop.permute.xlu1 %3682 }
 0x26e   : > { %3925 = vmatmul.mubr.msk.f32.gmra.mrb[4].mxu1 %vm386_vm1, %v3921_v58 }
 0x33c   : > { %v3579_v15 = vpop.f32.mrb[2].mxu0 }
 0x33d   : > { %v3685_v17 = vadd.f32 %v3678_v14, %v3579_v15  ;;  %v3581_v21 = vpop.f32.mrb[3].mxu0  ;;  %v3656_v23 = vpop.f32.mrb[2].mxu1 }
 0x33e   : > { %v3686_v24 = vadd.f32 %v3678_v14, %v3581_v21  ;;  %v3687_v25 = vadd.f32 %v3678_v14, %v3656_v23  ;;  %v3658_v26 = vpop.f32.mrb[3].mxu1 }
 0x33f   : > { %v3693_v20 = vmax.f32 %v3685_v17, 0.0  ;;  %v3688_v9 = vadd.f32 %v3678_v14, %v3658_v26 }
 0x340   : > { %v3694_v27 = vmax.f32 %v3686_v24, 0.0  ;;  %v3695_v18 = vmax.f32 %v3687_v25, 0.0  ;;  %v3585_v0 = vpop.f32.mrb[4].mxu0 }
 0x341   : > { %3701 = vst [vmem:[%s4797_s14] sm:$0xff] %v3693_v20  ;;  %v3696_v42 = vmax.f32 %v3688_v9, 0.0  ;;  %v3689_v16 = vadd.f32 %v3683_v22, %v3585_v0  ;;  %v3587_v11 = vpop.f32.mrb[5].mxu0  ;;  %v3662_v19 = vpop.f32.mrb[4].mxu1  ;;  %3724 = sbr.rel (!%p4163_p4) target bundleno = 848 (0x350), region = 52 }
 0x342   : > { %3702 = vst [vmem:[%s4797_s14 + $0x8] sm:$0xff] %v3694_v27  ;;  %3703 = vst [vmem:[%s4797_s14 + $0x10] sm:$0xff] %v3695_v18  ;;  %v3690_v12 = vadd.f32 %v3683_v22, %v3587_v11  ;;  %v3691_v46 = vadd.f32 %v3683_v22, %v3662_v19  ;;  %v3664_v28 = vpop.f32.mrb[5].mxu1 }
 0x343   : > { %3704 = vst [vmem:[%s4797_s14 + $0x18] sm:$0xff] %v3696_v42  ;;  %v3697_v29 = vmax.f32 %v3689_v16, 0.0  ;;  %v3692_v30 = vadd.f32 %v3683_v22, %v3664_v28 }
 0x344   : > { %v3698_v31 = vmax.f32 %v3690_v12, 0.0  ;;  %v3699_v43 = vmax.f32 %v3691_v46, 0.0 }
 0x345   : > { %3705 = vst [vmem:[%s4797_s14 + $0x20] sm:$0xff] %v3697_v29  ;;  %v3700_v35 = vmax.f32 %v3692_v30, 0.0 }
 0x346   : > { %3706 = vst [vmem:[%s4797_s14 + $0x28] sm:$0xff] %v3698_v31  ;;  %3707 = vst [vmem:[%s4797_s14 + $0x30] sm:$0xff] %v3699_v43 }
 0x347   : > { %3708 = vst [vmem:[%s4797_s14 + $0x38] sm:$0xff] %v3700_v35 }
 0x348   : > { %v3740_v44 = vld [vmem:[%s4797_s14] sm:$0xff] }
 0x349   : > { %v3742_v45 = vld [vmem:[%s4797_s14 + $0x8] sm:$0xff]  ;;  %v3744_v37 = vld [vmem:[%s4797_s14 + $0x10] sm:$0xff]  ;;  %3741 = vst [vmem:[%s3727_s22] sm:$0xff] %v3740_v44 }
 0x34a   : > { %v3746_v39 = vld [vmem:[%s4797_s14 + $0x18] sm:$0xff]  ;;  %3743 = vst [vmem:[%s3727_s22 + $0x8] sm:$0xff] %v3742_v45  ;;  %3745 = vst [vmem:[%s3727_s22 + $0x10] sm:$0xff] %v3744_v37 }
 0x34b   : > { %3747 = vst [vmem:[%s3727_s22 + $0x18] sm:$0xff] %v3746_v39 }
 0x34c   : > { %v3748_v3 = vld [vmem:[%s4797_s14 + $0x20] sm:$0xff] }
 0x34d   : > { %v3750_v40 = vld [vmem:[%s4797_s14 + $0x28] sm:$0xff]  ;;  %3749 = vst [vmem:[%s3727_s22 + $0x40] sm:$0xff] %v3748_v3  ;;  %v3752_v41 = vld [vmem:[%s4797_s14 + $0x30] sm:$0xff] }
 0x34e   : > { %3751 = vst [vmem:[%s3727_s22 + $0x48] sm:$0xff] %v3750_v40  ;;  %v3754_v13 = vld [vmem:[%s4797_s14 + $0x38] sm:$0xff]  ;;  %3753 = vst [vmem:[%s3727_s22 + $0x50] sm:$0xff] %v3752_v41 }
 0x34f   : > { %3755 = vst [vmem:[%s3727_s22 + $0x58] sm:$0xff] %v3754_v13 }
 0x350 PF: > { %p15_p8 = scmp.ge.s32.totalorder %s4153_s28, 4   ;;  %s4843_s24 = smov %s4082_s25 }
 0x351   : > { %s4844_s25 = smov %s4161_s8  ;;  %s4845_s26 = smov %s4153_s28 }
 0x352   :  { %17 = sbr.rel (!%p15_p8) target bundleno = 2 (0x2), region = 125 }

</bundles_post_ra>
